<compile_context>
chip_gen: v5e
topology: v5e:2x2
jax: 0.10.0
libtpu: 0.0.40
codegen_flags: <defaults>
</compile_context>

<pallas_src>
import functools

import jax
import jax.numpy as jnp
from jax.experimental import pallas as pl
from jax.experimental.pallas import tpu as pltpu


# ----------------------------- Pallas kernel -------------------------------

def _make_kernel(*, L, H, NM, T, Bp, I_pad, C_pad, HM, OUTP, w_offs, b_offs):
    H4 = 4 * H

    def kernel(x_ref, xc_ref, w_ref, b_ref, out_ref):
        # -------- hoisted parameter loads: static slices of the two packed buffers --------
        widx = [0]

        def next_w(rows, cols):
            r0 = w_offs[widx[0]]
            widx[0] += 1
            return w_ref[r0:r0 + rows, :cols]          # bf16 value

        bidx = [0]

        def next_b(cols):
            r0 = b_offs[bidx[0]]
            bidx[0] += 1
            return b_ref[r0:r0 + 1, :cols]             # (1, cols) f32

        w_ih0 = next_w(I_pad, H4)                      # (I_pad, 4H)
        w_hh = [next_w(H, H4)]                         # recurrent weight per layer
        w_ih = [None]                                  # layer-0 input proj is hoisted
        for _ in range(1, L):
            w_ih.append(next_w(H, H4))
            w_hh.append(next_w(H, H4))
        w_m0a = next_w(H, HM)                          # first MLP weight, LSTM-feature half
        w_m0b = next_w(C_pad, HM)                      # first MLP weight, x_classic half
        w_mlp = [next_w(HM, HM) for _ in range(1, NM)]
        w_out = next_w(HM, OUTP)

        b0 = next_b(H4)
        b_lstm = [next_b(H4) for _ in range(1, L)]
        b_m0 = next_b(HM)
        b_mlp = [next_b(HM) for _ in range(1, NM)]
        b_out = next_b(OUTP)

        # -------- hoisted layer-0 input projection: ONE matmul for all timesteps --------
        x_bf = x_ref[...].astype(jnp.bfloat16)                         # (T*Bp, I_pad)
        xw0 = jnp.dot(x_bf, w_ih0, preferred_element_type=jnp.float32) + b0   # (T*Bp, 4H) f32

        def cell(pre, c_prev):
            # gate order along 4H is [i, f, o, g] (permuted host-side);
            # full-vreg sigmoid/tanh blended with a lane mask -> no odd-width EUP inputs.
            lane = jax.lax.broadcasted_iota(jnp.int32, pre.shape, 1)
            act = jnp.where(lane < 3 * H, jax.nn.sigmoid(pre), jnp.tanh(pre))
            i_g = act[:, 0:H]
            f_g = act[:, H:2 * H]
            o_g = act[:, 2 * H:3 * H]
            g_g = act[:, 3 * H:4 * H]
            c_new = f_g * c_prev + i_g * g_g
            h_new = o_g * jnp.tanh(c_new)
            return h_new, c_new

        hs = [jnp.zeros((Bp, H), jnp.float32) for _ in range(L)]
        cs = [jnp.zeros((Bp, H), jnp.float32) for _ in range(L)]

        # Static unroll over T (small).  TODO(synk): for large T use lax.fori_loop with a
        # small unroll factor instead of a full unroll.
        for t in range(T):
            # Recurrent projections depend only on step t-1 state: issue them all up front
            # so they overlap the per-layer cell chain below (no packed matmul, no concat).
            rec = [jnp.dot(hs[l].astype(jnp.bfloat16), w_hh[l],
                           preferred_element_type=jnp.float32) for l in range(L)]

            pre = xw0[t * Bp:(t + 1) * Bp, :] + rec[0]      # static, sublane-aligned slice
            h_new, c_new = cell(pre, cs[0])
            hs[0], cs[0] = h_new, c_new
            inp = h_new
            for l in range(1, L):
                pre = (jnp.dot(inp.astype(jnp.bfloat16), w_ih[l],
                               preferred_element_type=jnp.float32)
                       + rec[l] + b_lstm[l - 1])
                h_new, c_new = cell(pre, cs[l])
                hs[l], cs[l] = h_new, c_new
                inp = h_new

        # -------- MLP head: split first-layer weight, no in-kernel feature concat --------
        xc_bf = xc_ref[...].astype(jnp.bfloat16)                       # (Bp, C_pad)
        feat = (jnp.dot(hs[L - 1].astype(jnp.bfloat16), w_m0a,
                        preferred_element_type=jnp.float32)
                + jnp.dot(xc_bf, w_m0b, preferred_element_type=jnp.float32)
                + b_m0)
        feat = jnp.maximum(feat, 0.0)
        for k in range(1, NM):
            feat = (jnp.dot(feat.astype(jnp.bfloat16), w_mlp[k - 1],
                            preferred_element_type=jnp.float32) + b_mlp[k - 1])
            feat = jnp.maximum(feat, 0.0)

        out = jnp.dot(feat.astype(jnp.bfloat16), w_out,
                      preferred_element_type=jnp.float32) + b_out
        out_ref[...] = out.astype(out_ref.dtype)                       # lane-dense (Bp, OUTP)

    return kernel


# ------------------------------- wrapper ------------------------------------

def lstm_mlp_forward(x_lstm, x_classic, params, *, num_layers_lstm, hidden_size_lstm,
                     num_layers_mlp, output_size):
    """params (PyTorch layout, pre-transposed to (in, out)):
       [w_ih0, w_hh0, b0, ..., w_ihL-1, w_hhL-1, bL-1, w_mlp0, b_mlp0, ..., w_out, b_out]
       LSTM biases are already b_ih + b_hh, shape (1, 4H); gate order [i, f, g, o]."""
    L, H, NM = num_layers_lstm, hidden_size_lstm, num_layers_mlp
    assert NM >= 1, "kernel expects at least one MLP hidden layer"
    B, T, I = x_lstm.shape
    C = x_classic.shape[1]
    HM = params[3 * L].shape[1]
    H4 = 4 * H

    def rnd_up(x, m):
        return -(-x // m) * m

    OUTP = rnd_up(output_size, 128)                 # lane-dense output width
    LW = rnd_up(max(H4, HM, OUTP), 128)             # common lane width of packed buffers
    Bp = rnd_up(max(B, 8), 8)                       # sublane-aligned batch
    I_pad = rnd_up(I, 16)                           # bf16 sublane-pack aligned K dims
    C_pad = rnd_up(C, 16)

    def perm_gates(a):
        # reorder the 4H axis from PyTorch [i, f, g, o] to kernel [i, f, o, g]
        return jnp.concatenate(
            [a[..., :2 * H], a[..., 3 * H:4 * H], a[..., 2 * H:3 * H]], axis=-1)

    # ---- split params: matmul weights -> bf16 buffer, biases -> f32 buffer ----
    w_list, b_list = [], []
    w_ih0, w_hh0, b0 = params[0], params[1], params[2]
    idx = 3
    w_list += [jnp.pad(perm_gates(w_ih0), ((0, I_pad - I), (0, 0))), perm_gates(w_hh0)]
    b_list += [perm_gates(b0)]
    for _ in range(1, L):
        w_ih, w_hh, b = params[idx], params[idx + 1], params[idx + 2]
        idx += 3
        w_list += [perm_gates(w_ih), perm_gates(w_hh)]
        b_list += [perm_gates(b)]
    w_m0, b_m0 = params[idx], params[idx + 1]
    idx += 2
    w_list += [w_m0[:H, :], jnp.pad(w_m0[H:H + C, :], ((0, C_pad - C), (0, 0)))]
    b_list += [b_m0]
    for _ in range(1, NM):
        w_list += [params[idx]]
        b_list += [params[idx + 1]]
        idx += 2
    w_out, b_out = params[idx], params[idx + 1]
    w_list += [w_out]
    b_list += [b_out]

    # ---- pack into two tile-aligned buffers (one DMA each, statically sliced in-kernel) ----
    def pack(mats, dtype, row_mult):
        offs, chunks, r = [], [], 0
        for m in mats:
            m = m.astype(dtype)
            rows = m.shape[0]
            pad_r = (-rows) % row_mult
            chunks.append(jnp.pad(m, ((0, pad_r), (0, LW - m.shape[1]))))
            offs.append(r)
            r += rows + pad_r
        return jnp.concatenate(chunks, axis=0), tuple(offs)

    w_buf, w_offs = pack(w_list, jnp.bfloat16, 16)      # all MXU operands, bf16
    b_buf, b_offs = pack(b_list, jnp.float32, 1)        # all biases, f32
    pad_b = (-b_buf.shape[0]) % 8
    if pad_b:
        b_buf = jnp.pad(b_buf, ((0, pad_b), (0, 0)))

    # ---- inputs: time-major, batch padded to a full 8-sublane group ----
    x_tb = jnp.transpose(x_lstm, (1, 0, 2))                                   # (T, B, I)
    x_tb = jnp.pad(x_tb, ((0, 0), (0, Bp - B), (0, I_pad - I))).reshape(T * Bp, I_pad)
    xc = jnp.pad(x_classic, ((0, Bp - B), (0, C_pad - C)))

    kernel = _make_kernel(L=L, H=H, NM=NM, T=T, Bp=Bp, I_pad=I_pad, C_pad=C_pad,
                          HM=HM, OUTP=OUTP, w_offs=w_offs, b_offs=b_offs)
    vmem = pl.BlockSpec(memory_space=pltpu.MemorySpace.VMEM)
    out = pl.pallas_call(
        kernel,
        out_shape=jax.ShapeDtypeStruct((Bp, OUTP), jnp.float32),
        in_specs=[vmem] * 4,
        out_specs=vmem,
    )(x_tb, xc, w_buf, b_buf)
    return out[:B, :output_size]


# ----------------------------- pure-JAX reference ---------------------------

def reference_forward(x_lstm, x_classic, params, *, num_layers_lstm, hidden_size_lstm,
                      num_layers_mlp):
    L, H = num_layers_lstm, hidden_size_lstm
    idx = 0
    lstm_w = []
    for _ in range(L):
        lstm_w.append((params[idx], params[idx + 1], params[idx + 2]))
        idx += 3
    mlp_w = []
    for _ in range(num_layers_mlp):
        mlp_w.append((params[idx], params[idx + 1]))
        idx += 2
    w_out, b_out = params[idx], params[idx + 1]

    B, T, _ = x_lstm.shape
    hs = [jnp.zeros((B, H), jnp.float32) for _ in range(L)]
    cs = [jnp.zeros((B, H), jnp.float32) for _ in range(L)]
    for t in range(T):
        inp = x_lstm[:, t, :]
        for l in range(L):
            w_ih, w_hh, b = lstm_w[l]
            gates = inp @ w_ih + hs[l] @ w_hh + b
            i_g = jax.nn.sigmoid(gates[:, 0:H])
            f_g = jax.nn.sigmoid(gates[:, H:2 * H])
            g_g = jnp.tanh(gates[:, 2 * H:3 * H])
            o_g = jax.nn.sigmoid(gates[:, 3 * H:4 * H])
            cs[l] = f_g * cs[l] + i_g * g_g
            hs[l] = o_g * jnp.tanh(cs[l])
            inp = hs[l]
    feat = jnp.concatenate([hs[-1], x_classic], axis=1)
    for w, b in mlp_w:
        feat = jnp.maximum(feat @ w + b, 0.0)
    return feat @ w_out + b_out


# --------------------------------- main -------------------------------------

if __name__ == "__main__":
    B, T = 2, 8
    input_size_lstm = 6
    input_size_classic = 10
    hidden_size_lstm = 32
    hidden_size_mlp = 32
    num_layers_lstm = 2
    num_layers_mlp = 2
    output_size = 4

    keys = iter(jax.random.split(jax.random.PRNGKey(0), 32))

    def nxt():
        return next(keys)

    scale = 0.1
    params = []
    # LSTM layers: W_ih (in, 4H), W_hh (H, 4H), combined bias (1, 4H) = b_ih + b_hh
    in_dim = input_size_lstm
    for _ in range(num_layers_lstm):
        w_ih = scale * jax.random.normal(nxt(), (in_dim, 4 * hidden_size_lstm), jnp.float32)
        w_hh = scale * jax.random.normal(nxt(), (hidden_size_lstm, 4 * hidden_size_lstm), jnp.float32)
        b_ih = scale * jax.random.normal(nxt(), (4 * hidden_size_lstm,), jnp.float32)
        b_hh = scale * jax.random.normal(nxt(), (4 * hidden_size_lstm,), jnp.float32)
        params += [w_ih, w_hh, (b_ih + b_hh)[None, :]]
        in_dim = hidden_size_lstm
    # MLP hidden layers
    in_mlp = hidden_size_lstm + input_size_classic
    for _ in range(num_layers_mlp):
        w = scale * jax.random.normal(nxt(), (in_mlp, hidden_size_mlp), jnp.float32)
        b = scale * jax.random.normal(nxt(), (hidden_size_mlp,), jnp.float32)
        params += [w, b[None, :]]
        in_mlp = hidden_size_mlp
    # output layer
    w_out = scale * jax.random.normal(nxt(), (hidden_size_mlp, output_size), jnp.float32)
    b_out = scale * jax.random.normal(nxt(), (output_size,), jnp.float32)
    params += [w_out, b_out[None, :]]

    # inputs
    x_lstm = jax.random.normal(nxt(), (B, T, input_size_lstm), jnp.float32)
    x_classic = jax.random.normal(nxt(), (B, input_size_classic), jnp.float32)

    fwd = functools.partial(
        lstm_mlp_forward,
        num_layers_lstm=num_layers_lstm,
        hidden_size_lstm=hidden_size_lstm,
        num_layers_mlp=num_layers_mlp,
        output_size=output_size,
    )
    out = fwd(x_lstm, x_classic, params)
    out = jax.block_until_ready(out)

    ref = reference_forward(
        x_lstm, x_classic, params,
        num_layers_lstm=num_layers_lstm,
        hidden_size_lstm=hidden_size_lstm,
        num_layers_mlp=num_layers_mlp,
    )
    assert out.shape == (B, output_size)
    # kernel uses bf16 MXU operands with f32 accumulation/state -> compare against the
    # f32 reference at a bf16-appropriate tolerance.
    max_err = float(jnp.max(jnp.abs(out - ref)))
    assert jnp.allclose(out, ref, atol=2e-2, rtol=2e-2), (max_err, out, ref)

    print("KERNEL_OK")
</pallas_src>

<mosaic_0001>
module attributes {stable_mosaic.version = 11 : i64} {
  func.func @kernel(%arg0: memref<64x16xf32, #tpu.memory_space<vmem>>, %arg1: memref<8x16xf32, #tpu.memory_space<vmem>>, %arg2: memref<224x128xbf16, #tpu.memory_space<vmem>>, %arg3: memref<8x128xf32, #tpu.memory_space<vmem>>, %arg4: memref<8x128xf32, #tpu.memory_space<vmem>>) attributes {dimension_semantics = [], scalar_prefetch = 0 : i64, scratch_operands = 0 : i64, tpu.core_type = #tpu.core_type<tc>} {
    %c0 = arith.constant 0 : index
    %c0_0 = arith.constant 0 : index
    %0 = vector.load %arg2[%c0, %c0_0] : memref<224x128xbf16, #tpu.memory_space<vmem>>, vector<16x128xbf16>
    %c16 = arith.constant 16 : index
    %c0_1 = arith.constant 0 : index
    %1 = vector.load %arg2[%c16, %c0_1] : memref<224x128xbf16, #tpu.memory_space<vmem>>, vector<32x128xbf16>
    %c48 = arith.constant 48 : index
    %c0_2 = arith.constant 0 : index
    %2 = vector.load %arg2[%c48, %c0_2] : memref<224x128xbf16, #tpu.memory_space<vmem>>, vector<32x128xbf16>
    %c80 = arith.constant 80 : index
    %c0_3 = arith.constant 0 : index
    %3 = vector.load %arg2[%c80, %c0_3] : memref<224x128xbf16, #tpu.memory_space<vmem>>, vector<32x128xbf16>
    %c112 = arith.constant 112 : index
    %c0_4 = arith.constant 0 : index
    %4 = vector.load %arg2[%c112, %c0_4] : memref<224x128xbf16, #tpu.memory_space<vmem>>, vector<32x32xbf16>
    %c144 = arith.constant 144 : index
    %c0_5 = arith.constant 0 : index
    %5 = vector.load %arg2[%c144, %c0_5] : memref<224x128xbf16, #tpu.memory_space<vmem>>, vector<16x32xbf16>
    %c160 = arith.constant 160 : index
    %c0_6 = arith.constant 0 : index
    %6 = vector.load %arg2[%c160, %c0_6] : memref<224x128xbf16, #tpu.memory_space<vmem>>, vector<32x32xbf16>
    %c192 = arith.constant 192 : index
    %c0_7 = arith.constant 0 : index
    %7 = vector.load %arg2[%c192, %c0_7] : memref<224x128xbf16, #tpu.memory_space<vmem>>, vector<32x128xbf16>
    %c0_8 = arith.constant 0 : index
    %c0_9 = arith.constant 0 : index
    %8 = vector.load %arg3[%c0_8, %c0_9] : memref<8x128xf32, #tpu.memory_space<vmem>>, vector<1x128xf32>
    %c1 = arith.constant 1 : index
    %c0_10 = arith.constant 0 : index
    %9 = vector.load %arg3[%c1, %c0_10] : memref<8x128xf32, #tpu.memory_space<vmem>>, vector<1x128xf32>
    %c2 = arith.constant 2 : index
    %c0_11 = arith.constant 0 : index
    %10 = vector.load %arg3[%c2, %c0_11] : memref<8x128xf32, #tpu.memory_space<vmem>>, vector<1x32xf32>
    %c3 = arith.constant 3 : index
    %c0_12 = arith.constant 0 : index
    %11 = vector.load %arg3[%c3, %c0_12] : memref<8x128xf32, #tpu.memory_space<vmem>>, vector<1x32xf32>
    %c4 = arith.constant 4 : index
    %c0_13 = arith.constant 0 : index
    %12 = vector.load %arg3[%c4, %c0_13] : memref<8x128xf32, #tpu.memory_space<vmem>>, vector<1x128xf32>
    %c0_14 = arith.constant 0 : index
    %c0_15 = arith.constant 0 : index
    %13 = vector.load %arg0[%c0_14, %c0_15] : memref<64x16xf32, #tpu.memory_space<vmem>>, vector<64x16xf32>
    %14 = arith.truncf %13 : vector<64x16xf32> to vector<64x16xbf16>
    %cst = arith.constant dense<0.000000e+00> : vector<64x128xf32>
    %15 = tpu.matmul %14, %0, %cst {dimension_numbers = #tpu.dot_dimension_numbers<[1], [0], [0], [1], [0, 0, 1, 1], [], []>} : vector<64x16xbf16>, vector<16x128xbf16>, vector<64x128xf32> -> vector<64x128xf32>
    %16 = vector.broadcast %8 : vector<1x128xf32> to vector<64x128xf32>
    %17 = arith.addf %15, %16 : vector<64x128xf32>
    %cst_16 = arith.constant 0.000000e+00 : f32
    %18 = vector.broadcast %cst_16 : f32 to vector<8x32xf32>
    %cst_17 = arith.constant 0.000000e+00 : f32
    %19 = vector.broadcast %cst_17 : f32 to vector<8x32xf32>
    %cst_18 = arith.constant 0.000000e+00 : f32
    %20 = vector.broadcast %cst_18 : f32 to vector<8x32xf32>
    %cst_19 = arith.constant 0.000000e+00 : f32
    %21 = vector.broadcast %cst_19 : f32 to vector<8x32xf32>
    %22 = arith.truncf %18 : vector<8x32xf32> to vector<8x32xbf16>
    %cst_20 = arith.constant dense<0.000000e+00> : vector<8x128xf32>
    %23 = tpu.matmul %22, %1, %cst_20 {dimension_numbers = #tpu.dot_dimension_numbers<[1], [0], [0], [1], [0, 0, 1, 1], [], []>} : vector<8x32xbf16>, vector<32x128xbf16>, vector<8x128xf32> -> vector<8x128xf32>
    %24 = arith.truncf %19 : vector<8x32xf32> to vector<8x32xbf16>
    %cst_21 = arith.constant dense<0.000000e+00> : vector<8x128xf32>
    %25 = tpu.matmul %24, %3, %cst_21 {dimension_numbers = #tpu.dot_dimension_numbers<[1], [0], [0], [1], [0, 0, 1, 1], [], []>} : vector<8x32xbf16>, vector<32x128xbf16>, vector<8x128xf32> -> vector<8x128xf32>
    %26 = vector.extract_strided_slice %17 {offsets = [0, 0], sizes = [8, 128], strides = [1, 1]} : vector<64x128xf32> to vector<8x128xf32>
    %27 = arith.addf %26, %23 : vector<8x128xf32>
    %28 = tpu.iota {dimensions = array<i32: 1>} : vector<8x128xi32>
    %c96_i32 = arith.constant 96 : i32
    %29 = vector.broadcast %c96_i32 : i32 to vector<8x128xi32>
    %30 = arith.cmpi slt, %28, %29 : vector<8x128xi32>
    %31 = arith.negf %27 : vector<8x128xf32>
    %32 = math.exp %31 : vector<8x128xf32>
    %cst_22 = arith.constant 1.000000e+00 : f32
    %33 = vector.broadcast %cst_22 : f32 to vector<8x128xf32>
    %34 = arith.addf %33, %32 : vector<8x128xf32>
    %35 = arith.divf %33, %34 : vector<8x128xf32>
    %36 = math.tanh %27 : vector<8x128xf32>
    %37 = arith.select %30, %35, %36 : vector<8x128xi1>, vector<8x128xf32>
    %38 = vector.extract_strided_slice %37 {offsets = [0, 0], sizes = [8, 32], strides = [1, 1]} : vector<8x128xf32> to vector<8x32xf32>
    %39 = vector.extract_strided_slice %37 {offsets = [0, 32], sizes = [8, 32], strides = [1, 1]} : vector<8x128xf32> to vector<8x32xf32>
    %40 = vector.extract_strided_slice %37 {offsets = [0, 64], sizes = [8, 32], strides = [1, 1]} : vector<8x128xf32> to vector<8x32xf32>
    %41 = vector.extract_strided_slice %37 {offsets = [0, 96], sizes = [8, 32], strides = [1, 1]} : vector<8x128xf32> to vector<8x32xf32>
    %42 = arith.mulf %39, %20 : vector<8x32xf32>
    %43 = arith.mulf %38, %41 : vector<8x32xf32>
    %44 = arith.addf %42, %43 : vector<8x32xf32>
    %45 = math.tanh %44 : vector<8x32xf32>
    %46 = arith.mulf %40, %45 : vector<8x32xf32>
    %47 = arith.truncf %46 : vector<8x32xf32> to vector<8x32xbf16>
    %cst_23 = arith.constant dense<0.000000e+00> : vector<8x128xf32>
    %48 = tpu.matmul %47, %2, %cst_23 {dimension_numbers = #tpu.dot_dimension_numbers<[1], [0], [0], [1], [0, 0, 1, 1], [], []>} : vector<8x32xbf16>, vector<32x128xbf16>, vector<8x128xf32> -> vector<8x128xf32>
    %49 = arith.addf %48, %25 : vector<8x128xf32>
    %50 = vector.broadcast %9 : vector<1x128xf32> to vector<8x128xf32>
    %51 = arith.addf %49, %50 : vector<8x128xf32>
    %52 = tpu.iota {dimensions = array<i32: 1>} : vector<8x128xi32>
    %c96_i32_24 = arith.constant 96 : i32
    %53 = vector.broadcast %c96_i32_24 : i32 to vector<8x128xi32>
    %54 = arith.cmpi slt, %52, %53 : vector<8x128xi32>
    %55 = arith.negf %51 : vector<8x128xf32>
    %56 = math.exp %55 : vector<8x128xf32>
    %cst_25 = arith.constant 1.000000e+00 : f32
    %57 = vector.broadcast %cst_25 : f32 to vector<8x128xf32>
    %58 = arith.addf %57, %56 : vector<8x128xf32>
    %59 = arith.divf %57, %58 : vector<8x128xf32>
    %60 = math.tanh %51 : vector<8x128xf32>
    %61 = arith.select %54, %59, %60 : vector<8x128xi1>, vector<8x128xf32>
    %62 = vector.extract_strided_slice %61 {offsets = [0, 0], sizes = [8, 32], strides = [1, 1]} : vector<8x128xf32> to vector<8x32xf32>
    %63 = vector.extract_strided_slice %61 {offsets = [0, 32], sizes = [8, 32], strides = [1, 1]} : vector<8x128xf32> to vector<8x32xf32>
    %64 = vector.extract_strided_slice %61 {offsets = [0, 64], sizes = [8, 32], strides = [1, 1]} : vector<8x128xf32> to vector<8x32xf32>
    %65 = vector.extract_strided_slice %61 {offsets = [0, 96], sizes = [8, 32], strides = [1, 1]} : vector<8x128xf32> to vector<8x32xf32>
    %66 = arith.mulf %63, %21 : vector<8x32xf32>
    %67 = arith.mulf %62, %65 : vector<8x32xf32>
    %68 = arith.addf %66, %67 : vector<8x32xf32>
    %69 = math.tanh %68 : vector<8x32xf32>
    %70 = arith.mulf %64, %69 : vector<8x32xf32>
    %71 = arith.truncf %46 : vector<8x32xf32> to vector<8x32xbf16>
    %cst_26 = arith.constant dense<0.000000e+00> : vector<8x128xf32>
    %72 = tpu.matmul %71, %1, %cst_26 {dimension_numbers = #tpu.dot_dimension_numbers<[1], [0], [0], [1], [0, 0, 1, 1], [], []>} : vector<8x32xbf16>, vector<32x128xbf16>, vector<8x128xf32> -> vector<8x128xf32>
    %73 = arith.truncf %70 : vector<8x32xf32> to vector<8x32xbf16>
    %cst_27 = arith.constant dense<0.000000e+00> : vector<8x128xf32>
    %74 = tpu.matmul %73, %3, %cst_27 {dimension_numbers = #tpu.dot_dimension_numbers<[1], [0], [0], [1], [0, 0, 1, 1], [], []>} : vector<8x32xbf16>, vector<32x128xbf16>, vector<8x128xf32> -> vector<8x128xf32>
    %75 = vector.extract_strided_slice %17 {offsets = [8, 0], sizes = [8, 128], strides = [1, 1]} : vector<64x128xf32> to vector<8x128xf32>
    %76 = arith.addf %75, %72 : vector<8x128xf32>
    %77 = tpu.iota {dimensions = array<i32: 1>} : vector<8x128xi32>
    %c96_i32_28 = arith.constant 96 : i32
    %78 = vector.broadcast %c96_i32_28 : i32 to vector<8x128xi32>
    %79 = arith.cmpi slt, %77, %78 : vector<8x128xi32>
    %80 = arith.negf %76 : vector<8x128xf32>
    %81 = math.exp %80 : vector<8x128xf32>
    %cst_29 = arith.constant 1.000000e+00 : f32
    %82 = vector.broadcast %cst_29 : f32 to vector<8x128xf32>
    %83 = arith.addf %82, %81 : vector<8x128xf32>
    %84 = arith.divf %82, %83 : vector<8x128xf32>
    %85 = math.tanh %76 : vector<8x128xf32>
    %86 = arith.select %79, %84, %85 : vector<8x128xi1>, vector<8x128xf32>
    %87 = vector.extract_strided_slice %86 {offsets = [0, 0], sizes = [8, 32], strides = [1, 1]} : vector<8x128xf32> to vector<8x32xf32>
    %88 = vector.extract_strided_slice %86 {offsets = [0, 32], sizes = [8, 32], strides = [1, 1]} : vector<8x128xf32> to vector<8x32xf32>
    %89 = vector.extract_strided_slice %86 {offsets = [0, 64], sizes = [8, 32], strides = [1, 1]} : vector<8x128xf32> to vector<8x32xf32>
    %90 = vector.extract_strided_slice %86 {offsets = [0, 96], sizes = [8, 32], strides = [1, 1]} : vector<8x128xf32> to vector<8x32xf32>
    %91 = arith.mulf %88, %44 : vector<8x32xf32>
    %92 = arith.mulf %87, %90 : vector<8x32xf32>
    %93 = arith.addf %91, %92 : vector<8x32xf32>
    %94 = math.tanh %93 : vector<8x32xf32>
    %95 = arith.mulf %89, %94 : vector<8x32xf32>
    %96 = arith.truncf %95 : vector<8x32xf32> to vector<8x32xbf16>
    %cst_30 = arith.constant dense<0.000000e+00> : vector<8x128xf32>
    %97 = tpu.matmul %96, %2, %cst_30 {dimension_numbers = #tpu.dot_dimension_numbers<[1], [0], [0], [1], [0, 0, 1, 1], [], []>} : vector<8x32xbf16>, vector<32x128xbf16>, vector<8x128xf32> -> vector<8x128xf32>
    %98 = arith.addf %97, %74 : vector<8x128xf32>
    %99 = vector.broadcast %9 : vector<1x128xf32> to vector<8x128xf32>
    %100 = arith.addf %98, %99 : vector<8x128xf32>
    %101 = tpu.iota {dimensions = array<i32: 1>} : vector<8x128xi32>
    %c96_i32_31 = arith.constant 96 : i32
    %102 = vector.broadcast %c96_i32_31 : i32 to vector<8x128xi32>
    %103 = arith.cmpi slt, %101, %102 : vector<8x128xi32>
    %104 = arith.negf %100 : vector<8x128xf32>
    %105 = math.exp %104 : vector<8x128xf32>
    %cst_32 = arith.constant 1.000000e+00 : f32
    %106 = vector.broadcast %cst_32 : f32 to vector<8x128xf32>
    %107 = arith.addf %106, %105 : vector<8x128xf32>
    %108 = arith.divf %106, %107 : vector<8x128xf32>
    %109 = math.tanh %100 : vector<8x128xf32>
    %110 = arith.select %103, %108, %109 : vector<8x128xi1>, vector<8x128xf32>
    %111 = vector.extract_strided_slice %110 {offsets = [0, 0], sizes = [8, 32], strides = [1, 1]} : vector<8x128xf32> to vector<8x32xf32>
    %112 = vector.extract_strided_slice %110 {offsets = [0, 32], sizes = [8, 32], strides = [1, 1]} : vector<8x128xf32> to vector<8x32xf32>
    %113 = vector.extract_strided_slice %110 {offsets = [0, 64], sizes = [8, 32], strides = [1, 1]} : vector<8x128xf32> to vector<8x32xf32>
    %114 = vector.extract_strided_slice %110 {offsets = [0, 96], sizes = [8, 32], strides = [1, 1]} : vector<8x128xf32> to vector<8x32xf32>
    %115 = arith.mulf %112, %68 : vector<8x32xf32>
    %116 = arith.mulf %111, %114 : vector<8x32xf32>
    %117 = arith.addf %115, %116 : vector<8x32xf32>
    %118 = math.tanh %117 : vector<8x32xf32>
    %119 = arith.mulf %113, %118 : vector<8x32xf32>
    %120 = arith.truncf %95 : vector<8x32xf32> to vector<8x32xbf16>
    %cst_33 = arith.constant dense<0.000000e+00> : vector<8x128xf32>
    %121 = tpu.matmul %120, %1, %cst_33 {dimension_numbers = #tpu.dot_dimension_numbers<[1], [0], [0], [1], [0, 0, 1, 1], [], []>} : vector<8x32xbf16>, vector<32x128xbf16>, vector<8x128xf32> -> vector<8x128xf32>
    %122 = arith.truncf %119 : vector<8x32xf32> to vector<8x32xbf16>
    %cst_34 = arith.constant dense<0.000000e+00> : vector<8x128xf32>
    %123 = tpu.matmul %122, %3, %cst_34 {dimension_numbers = #tpu.dot_dimension_numbers<[1], [0], [0], [1], [0, 0, 1, 1], [], []>} : vector<8x32xbf16>, vector<32x128xbf16>, vector<8x128xf32> -> vector<8x128xf32>
    %124 = vector.extract_strided_slice %17 {offsets = [16, 0], sizes = [8, 128], strides = [1, 1]} : vector<64x128xf32> to vector<8x128xf32>
    %125 = arith.addf %124, %121 : vector<8x128xf32>
    %126 = tpu.iota {dimensions = array<i32: 1>} : vector<8x128xi32>
    %c96_i32_35 = arith.constant 96 : i32
    %127 = vector.broadcast %c96_i32_35 : i32 to vector<8x128xi32>
    %128 = arith.cmpi slt, %126, %127 : vector<8x128xi32>
    %129 = arith.negf %125 : vector<8x128xf32>
    %130 = math.exp %129 : vector<8x128xf32>
    %cst_36 = arith.constant 1.000000e+00 : f32
    %131 = vector.broadcast %cst_36 : f32 to vector<8x128xf32>
    %132 = arith.addf %131, %130 : vector<8x128xf32>
    %133 = arith.divf %131, %132 : vector<8x128xf32>
    %134 = math.tanh %125 : vector<8x128xf32>
    %135 = arith.select %128, %133, %134 : vector<8x128xi1>, vector<8x128xf32>
    %136 = vector.extract_strided_slice %135 {offsets = [0, 0], sizes = [8, 32], strides = [1, 1]} : vector<8x128xf32> to vector<8x32xf32>
    %137 = vector.extract_strided_slice %135 {offsets = [0, 32], sizes = [8, 32], strides = [1, 1]} : vector<8x128xf32> to vector<8x32xf32>
    %138 = vector.extract_strided_slice %135 {offsets = [0, 64], sizes = [8, 32], strides = [1, 1]} : vector<8x128xf32> to vector<8x32xf32>
    %139 = vector.extract_strided_slice %135 {offsets = [0, 96], sizes = [8, 32], strides = [1, 1]} : vector<8x128xf32> to vector<8x32xf32>
    %140 = arith.mulf %137, %93 : vector<8x32xf32>
    %141 = arith.mulf %136, %139 : vector<8x32xf32>
    %142 = arith.addf %140, %141 : vector<8x32xf32>
    %143 = math.tanh %142 : vector<8x32xf32>
    %144 = arith.mulf %138, %143 : vector<8x32xf32>
    %145 = arith.truncf %144 : vector<8x32xf32> to vector<8x32xbf16>
    %cst_37 = arith.constant dense<0.000000e+00> : vector<8x128xf32>
    %146 = tpu.matmul %145, %2, %cst_37 {dimension_numbers = #tpu.dot_dimension_numbers<[1], [0], [0], [1], [0, 0, 1, 1], [], []>} : vector<8x32xbf16>, vector<32x128xbf16>, vector<8x128xf32> -> vector<8x128xf32>
    %147 = arith.addf %146, %123 : vector<8x128xf32>
    %148 = vector.broadcast %9 : vector<1x128xf32> to vector<8x128xf32>
    %149 = arith.addf %147, %148 : vector<8x128xf32>
    %150 = tpu.iota {dimensions = array<i32: 1>} : vector<8x128xi32>
    %c96_i32_38 = arith.constant 96 : i32
    %151 = vector.broadcast %c96_i32_38 : i32 to vector<8x128xi32>
    %152 = arith.cmpi slt, %150, %151 : vector<8x128xi32>
    %153 = arith.negf %149 : vector<8x128xf32>
    %154 = math.exp %153 : vector<8x128xf32>
    %cst_39 = arith.constant 1.000000e+00 : f32
    %155 = vector.broadcast %cst_39 : f32 to vector<8x128xf32>
    %156 = arith.addf %155, %154 : vector<8x128xf32>
    %157 = arith.divf %155, %156 : vector<8x128xf32>
    %158 = math.tanh %149 : vector<8x128xf32>
    %159 = arith.select %152, %157, %158 : vector<8x128xi1>, vector<8x128xf32>
    %160 = vector.extract_strided_slice %159 {offsets = [0, 0], sizes = [8, 32], strides = [1, 1]} : vector<8x128xf32> to vector<8x32xf32>
    %161 = vector.extract_strided_slice %159 {offsets = [0, 32], sizes = [8, 32], strides = [1, 1]} : vector<8x128xf32> to vector<8x32xf32>
    %162 = vector.extract_strided_slice %159 {offsets = [0, 64], sizes = [8, 32], strides = [1, 1]} : vector<8x128xf32> to vector<8x32xf32>
    %163 = vector.extract_strided_slice %159 {offsets = [0, 96], sizes = [8, 32], strides = [1, 1]} : vector<8x128xf32> to vector<8x32xf32>
    %164 = arith.mulf %161, %117 : vector<8x32xf32>
    %165 = arith.mulf %160, %163 : vector<8x32xf32>
    %166 = arith.addf %164, %165 : vector<8x32xf32>
    %167 = math.tanh %166 : vector<8x32xf32>
    %168 = arith.mulf %162, %167 : vector<8x32xf32>
    %169 = arith.truncf %144 : vector<8x32xf32> to vector<8x32xbf16>
    %cst_40 = arith.constant dense<0.000000e+00> : vector<8x128xf32>
    %170 = tpu.matmul %169, %1, %cst_40 {dimension_numbers = #tpu.dot_dimension_numbers<[1], [0], [0], [1], [0, 0, 1, 1], [], []>} : vector<8x32xbf16>, vector<32x128xbf16>, vector<8x128xf32> -> vector<8x128xf32>
    %171 = arith.truncf %168 : vector<8x32xf32> to vector<8x32xbf16>
    %cst_41 = arith.constant dense<0.000000e+00> : vector<8x128xf32>
    %172 = tpu.matmul %171, %3, %cst_41 {dimension_numbers = #tpu.dot_dimension_numbers<[1], [0], [0], [1], [0, 0, 1, 1], [], []>} : vector<8x32xbf16>, vector<32x128xbf16>, vector<8x128xf32> -> vector<8x128xf32>
    %173 = vector.extract_strided_slice %17 {offsets = [24, 0], sizes = [8, 128], strides = [1, 1]} : vector<64x128xf32> to vector<8x128xf32>
    %174 = arith.addf %173, %170 : vector<8x128xf32>
    %175 = tpu.iota {dimensions = array<i32: 1>} : vector<8x128xi32>
    %c96_i32_42 = arith.constant 96 : i32
    %176 = vector.broadcast %c96_i32_42 : i32 to vector<8x128xi32>
    %177 = arith.cmpi slt, %175, %176 : vector<8x128xi32>
    %178 = arith.negf %174 : vector<8x128xf32>
    %179 = math.exp %178 : vector<8x128xf32>
    %cst_43 = arith.constant 1.000000e+00 : f32
    %180 = vector.broadcast %cst_43 : f32 to vector<8x128xf32>
    %181 = arith.addf %180, %179 : vector<8x128xf32>
    %182 = arith.divf %180, %181 : vector<8x128xf32>
    %183 = math.tanh %174 : vector<8x128xf32>
    %184 = arith.select %177, %182, %183 : vector<8x128xi1>, vector<8x128xf32>
    %185 = vector.extract_strided_slice %184 {offsets = [0, 0], sizes = [8, 32], strides = [1, 1]} : vector<8x128xf32> to vector<8x32xf32>
    %186 = vector.extract_strided_slice %184 {offsets = [0, 32], sizes = [8, 32], strides = [1, 1]} : vector<8x128xf32> to vector<8x32xf32>
    %187 = vector.extract_strided_slice %184 {offsets = [0, 64], sizes = [8, 32], strides = [1, 1]} : vector<8x128xf32> to vector<8x32xf32>
    %188 = vector.extract_strided_slice %184 {offsets = [0, 96], sizes = [8, 32], strides = [1, 1]} : vector<8x128xf32> to vector<8x32xf32>
    %189 = arith.mulf %186, %142 : vector<8x32xf32>
    %190 = arith.mulf %185, %188 : vector<8x32xf32>
    %191 = arith.addf %189, %190 : vector<8x32xf32>
    %192 = math.tanh %191 : vector<8x32xf32>
    %193 = arith.mulf %187, %192 : vector<8x32xf32>
    %194 = arith.truncf %193 : vector<8x32xf32> to vector<8x32xbf16>
    %cst_44 = arith.constant dense<0.000000e+00> : vector<8x128xf32>
    %195 = tpu.matmul %194, %2, %cst_44 {dimension_numbers = #tpu.dot_dimension_numbers<[1], [0], [0], [1], [0, 0, 1, 1], [], []>} : vector<8x32xbf16>, vector<32x128xbf16>, vector<8x128xf32> -> vector<8x128xf32>
    %196 = arith.addf %195, %172 : vector<8x128xf32>
    %197 = vector.broadcast %9 : vector<1x128xf32> to vector<8x128xf32>
    %198 = arith.addf %196, %197 : vector<8x128xf32>
    %199 = tpu.iota {dimensions = array<i32: 1>} : vector<8x128xi32>
    %c96_i32_45 = arith.constant 96 : i32
    %200 = vector.broadcast %c96_i32_45 : i32 to vector<8x128xi32>
    %201 = arith.cmpi slt, %199, %200 : vector<8x128xi32>
    %202 = arith.negf %198 : vector<8x128xf32>
    %203 = math.exp %202 : vector<8x128xf32>
    %cst_46 = arith.constant 1.000000e+00 : f32
    %204 = vector.broadcast %cst_46 : f32 to vector<8x128xf32>
    %205 = arith.addf %204, %203 : vector<8x128xf32>
    %206 = arith.divf %204, %205 : vector<8x128xf32>
    %207 = math.tanh %198 : vector<8x128xf32>
    %208 = arith.select %201, %206, %207 : vector<8x128xi1>, vector<8x128xf32>
    %209 = vector.extract_strided_slice %208 {offsets = [0, 0], sizes = [8, 32], strides = [1, 1]} : vector<8x128xf32> to vector<8x32xf32>
    %210 = vector.extract_strided_slice %208 {offsets = [0, 32], sizes = [8, 32], strides = [1, 1]} : vector<8x128xf32> to vector<8x32xf32>
    %211 = vector.extract_strided_slice %208 {offsets = [0, 64], sizes = [8, 32], strides = [1, 1]} : vector<8x128xf32> to vector<8x32xf32>
    %212 = vector.extract_strided_slice %208 {offsets = [0, 96], sizes = [8, 32], strides = [1, 1]} : vector<8x128xf32> to vector<8x32xf32>
    %213 = arith.mulf %210, %166 : vector<8x32xf32>
    %214 = arith.mulf %209, %212 : vector<8x32xf32>
    %215 = arith.addf %213, %214 : vector<8x32xf32>
    %216 = math.tanh %215 : vector<8x32xf32>
    %217 = arith.mulf %211, %216 : vector<8x32xf32>
    %218 = arith.truncf %193 : vector<8x32xf32> to vector<8x32xbf16>
    %cst_47 = arith.constant dense<0.000000e+00> : vector<8x128xf32>
    %219 = tpu.matmul %218, %1, %cst_47 {dimension_numbers = #tpu.dot_dimension_numbers<[1], [0], [0], [1], [0, 0, 1, 1], [], []>} : vector<8x32xbf16>, vector<32x128xbf16>, vector<8x128xf32> -> vector<8x128xf32>
    %220 = arith.truncf %217 : vector<8x32xf32> to vector<8x32xbf16>
    %cst_48 = arith.constant dense<0.000000e+00> : vector<8x128xf32>
    %221 = tpu.matmul %220, %3, %cst_48 {dimension_numbers = #tpu.dot_dimension_numbers<[1], [0], [0], [1], [0, 0, 1, 1], [], []>} : vector<8x32xbf16>, vector<32x128xbf16>, vector<8x128xf32> -> vector<8x128xf32>
    %222 = vector.extract_strided_slice %17 {offsets = [32, 0], sizes = [8, 128], strides = [1, 1]} : vector<64x128xf32> to vector<8x128xf32>
    %223 = arith.addf %222, %219 : vector<8x128xf32>
    %224 = tpu.iota {dimensions = array<i32: 1>} : vector<8x128xi32>
    %c96_i32_49 = arith.constant 96 : i32
    %225 = vector.broadcast %c96_i32_49 : i32 to vector<8x128xi32>
    %226 = arith.cmpi slt, %224, %225 : vector<8x128xi32>
    %227 = arith.negf %223 : vector<8x128xf32>
    %228 = math.exp %227 : vector<8x128xf32>
    %cst_50 = arith.constant 1.000000e+00 : f32
    %229 = vector.broadcast %cst_50 : f32 to vector<8x128xf32>
    %230 = arith.addf %229, %228 : vector<8x128xf32>
    %231 = arith.divf %229, %230 : vector<8x128xf32>
    %232 = math.tanh %223 : vector<8x128xf32>
    %233 = arith.select %226, %231, %232 : vector<8x128xi1>, vector<8x128xf32>
    %234 = vector.extract_strided_slice %233 {offsets = [0, 0], sizes = [8, 32], strides = [1, 1]} : vector<8x128xf32> to vector<8x32xf32>
    %235 = vector.extract_strided_slice %233 {offsets = [0, 32], sizes = [8, 32], strides = [1, 1]} : vector<8x128xf32> to vector<8x32xf32>
    %236 = vector.extract_strided_slice %233 {offsets = [0, 64], sizes = [8, 32], strides = [1, 1]} : vector<8x128xf32> to vector<8x32xf32>
    %237 = vector.extract_strided_slice %233 {offsets = [0, 96], sizes = [8, 32], strides = [1, 1]} : vector<8x128xf32> to vector<8x32xf32>
    %238 = arith.mulf %235, %191 : vector<8x32xf32>
    %239 = arith.mulf %234, %237 : vector<8x32xf32>
    %240 = arith.addf %238, %239 : vector<8x32xf32>
    %241 = math.tanh %240 : vector<8x32xf32>
    %242 = arith.mulf %236, %241 : vector<8x32xf32>
    %243 = arith.truncf %242 : vector<8x32xf32> to vector<8x32xbf16>
    %cst_51 = arith.constant dense<0.000000e+00> : vector<8x128xf32>
    %244 = tpu.matmul %243, %2, %cst_51 {dimension_numbers = #tpu.dot_dimension_numbers<[1], [0], [0], [1], [0, 0, 1, 1], [], []>} : vector<8x32xbf16>, vector<32x128xbf16>, vector<8x128xf32> -> vector<8x128xf32>
    %245 = arith.addf %244, %221 : vector<8x128xf32>
    %246 = vector.broadcast %9 : vector<1x128xf32> to vector<8x128xf32>
    %247 = arith.addf %245, %246 : vector<8x128xf32>
    %248 = tpu.iota {dimensions = array<i32: 1>} : vector<8x128xi32>
    %c96_i32_52 = arith.constant 96 : i32
    %249 = vector.broadcast %c96_i32_52 : i32 to vector<8x128xi32>
    %250 = arith.cmpi slt, %248, %249 : vector<8x128xi32>
    %251 = arith.negf %247 : vector<8x128xf32>
    %252 = math.exp %251 : vector<8x128xf32>
    %cst_53 = arith.constant 1.000000e+00 : f32
    %253 = vector.broadcast %cst_53 : f32 to vector<8x128xf32>
    %254 = arith.addf %253, %252 : vector<8x128xf32>
    %255 = arith.divf %253, %254 : vector<8x128xf32>
    %256 = math.tanh %247 : vector<8x128xf32>
    %257 = arith.select %250, %255, %256 : vector<8x128xi1>, vector<8x128xf32>
    %258 = vector.extract_strided_slice %257 {offsets = [0, 0], sizes = [8, 32], strides = [1, 1]} : vector<8x128xf32> to vector<8x32xf32>
    %259 = vector.extract_strided_slice %257 {offsets = [0, 32], sizes = [8, 32], strides = [1, 1]} : vector<8x128xf32> to vector<8x32xf32>
    %260 = vector.extract_strided_slice %257 {offsets = [0, 64], sizes = [8, 32], strides = [1, 1]} : vector<8x128xf32> to vector<8x32xf32>
    %261 = vector.extract_strided_slice %257 {offsets = [0, 96], sizes = [8, 32], strides = [1, 1]} : vector<8x128xf32> to vector<8x32xf32>
    %262 = arith.mulf %259, %215 : vector<8x32xf32>
    %263 = arith.mulf %258, %261 : vector<8x32xf32>
    %264 = arith.addf %262, %263 : vector<8x32xf32>
    %265 = math.tanh %264 : vector<8x32xf32>
    %266 = arith.mulf %260, %265 : vector<8x32xf32>
    %267 = arith.truncf %242 : vector<8x32xf32> to vector<8x32xbf16>
    %cst_54 = arith.constant dense<0.000000e+00> : vector<8x128xf32>
    %268 = tpu.matmul %267, %1, %cst_54 {dimension_numbers = #tpu.dot_dimension_numbers<[1], [0], [0], [1], [0, 0, 1, 1], [], []>} : vector<8x32xbf16>, vector<32x128xbf16>, vector<8x128xf32> -> vector<8x128xf32>
    %269 = arith.truncf %266 : vector<8x32xf32> to vector<8x32xbf16>
    %cst_55 = arith.constant dense<0.000000e+00> : vector<8x128xf32>
    %270 = tpu.matmul %269, %3, %cst_55 {dimension_numbers = #tpu.dot_dimension_numbers<[1], [0], [0], [1], [0, 0, 1, 1], [], []>} : vector<8x32xbf16>, vector<32x128xbf16>, vector<8x128xf32> -> vector<8x128xf32>
    %271 = vector.extract_strided_slice %17 {offsets = [40, 0], sizes = [8, 128], strides = [1, 1]} : vector<64x128xf32> to vector<8x128xf32>
    %272 = arith.addf %271, %268 : vector<8x128xf32>
    %273 = tpu.iota {dimensions = array<i32: 1>} : vector<8x128xi32>
    %c96_i32_56 = arith.constant 96 : i32
    %274 = vector.broadcast %c96_i32_56 : i32 to vector<8x128xi32>
    %275 = arith.cmpi slt, %273, %274 : vector<8x128xi32>
    %276 = arith.negf %272 : vector<8x128xf32>
    %277 = math.exp %276 : vector<8x128xf32>
    %cst_57 = arith.constant 1.000000e+00 : f32
    %278 = vector.broadcast %cst_57 : f32 to vector<8x128xf32>
    %279 = arith.addf %278, %277 : vector<8x128xf32>
    %280 = arith.divf %278, %279 : vector<8x128xf32>
    %281 = math.tanh %272 : vector<8x128xf32>
    %282 = arith.select %275, %280, %281 : vector<8x128xi1>, vector<8x128xf32>
    %283 = vector.extract_strided_slice %282 {offsets = [0, 0], sizes = [8, 32], strides = [1, 1]} : vector<8x128xf32> to vector<8x32xf32>
    %284 = vector.extract_strided_slice %282 {offsets = [0, 32], sizes = [8, 32], strides = [1, 1]} : vector<8x128xf32> to vector<8x32xf32>
    %285 = vector.extract_strided_slice %282 {offsets = [0, 64], sizes = [8, 32], strides = [1, 1]} : vector<8x128xf32> to vector<8x32xf32>
    %286 = vector.extract_strided_slice %282 {offsets = [0, 96], sizes = [8, 32], strides = [1, 1]} : vector<8x128xf32> to vector<8x32xf32>
    %287 = arith.mulf %284, %240 : vector<8x32xf32>
    %288 = arith.mulf %283, %286 : vector<8x32xf32>
    %289 = arith.addf %287, %288 : vector<8x32xf32>
    %290 = math.tanh %289 : vector<8x32xf32>
    %291 = arith.mulf %285, %290 : vector<8x32xf32>
    %292 = arith.truncf %291 : vector<8x32xf32> to vector<8x32xbf16>
    %cst_58 = arith.constant dense<0.000000e+00> : vector<8x128xf32>
    %293 = tpu.matmul %292, %2, %cst_58 {dimension_numbers = #tpu.dot_dimension_numbers<[1], [0], [0], [1], [0, 0, 1, 1], [], []>} : vector<8x32xbf16>, vector<32x128xbf16>, vector<8x128xf32> -> vector<8x128xf32>
    %294 = arith.addf %293, %270 : vector<8x128xf32>
    %295 = vector.broadcast %9 : vector<1x128xf32> to vector<8x128xf32>
    %296 = arith.addf %294, %295 : vector<8x128xf32>
    %297 = tpu.iota {dimensions = array<i32: 1>} : vector<8x128xi32>
    %c96_i32_59 = arith.constant 96 : i32
    %298 = vector.broadcast %c96_i32_59 : i32 to vector<8x128xi32>
    %299 = arith.cmpi slt, %297, %298 : vector<8x128xi32>
    %300 = arith.negf %296 : vector<8x128xf32>
    %301 = math.exp %300 : vector<8x128xf32>
    %cst_60 = arith.constant 1.000000e+00 : f32
    %302 = vector.broadcast %cst_60 : f32 to vector<8x128xf32>
    %303 = arith.addf %302, %301 : vector<8x128xf32>
    %304 = arith.divf %302, %303 : vector<8x128xf32>
    %305 = math.tanh %296 : vector<8x128xf32>
    %306 = arith.select %299, %304, %305 : vector<8x128xi1>, vector<8x128xf32>
    %307 = vector.extract_strided_slice %306 {offsets = [0, 0], sizes = [8, 32], strides = [1, 1]} : vector<8x128xf32> to vector<8x32xf32>
    %308 = vector.extract_strided_slice %306 {offsets = [0, 32], sizes = [8, 32], strides = [1, 1]} : vector<8x128xf32> to vector<8x32xf32>
    %309 = vector.extract_strided_slice %306 {offsets = [0, 64], sizes = [8, 32], strides = [1, 1]} : vector<8x128xf32> to vector<8x32xf32>
    %310 = vector.extract_strided_slice %306 {offsets = [0, 96], sizes = [8, 32], strides = [1, 1]} : vector<8x128xf32> to vector<8x32xf32>
    %311 = arith.mulf %308, %264 : vector<8x32xf32>
    %312 = arith.mulf %307, %310 : vector<8x32xf32>
    %313 = arith.addf %311, %312 : vector<8x32xf32>
    %314 = math.tanh %313 : vector<8x32xf32>
    %315 = arith.mulf %309, %314 : vector<8x32xf32>
    %316 = arith.truncf %291 : vector<8x32xf32> to vector<8x32xbf16>
    %cst_61 = arith.constant dense<0.000000e+00> : vector<8x128xf32>
    %317 = tpu.matmul %316, %1, %cst_61 {dimension_numbers = #tpu.dot_dimension_numbers<[1], [0], [0], [1], [0, 0, 1, 1], [], []>} : vector<8x32xbf16>, vector<32x128xbf16>, vector<8x128xf32> -> vector<8x128xf32>
    %318 = arith.truncf %315 : vector<8x32xf32> to vector<8x32xbf16>
    %cst_62 = arith.constant dense<0.000000e+00> : vector<8x128xf32>
    %319 = tpu.matmul %318, %3, %cst_62 {dimension_numbers = #tpu.dot_dimension_numbers<[1], [0], [0], [1], [0, 0, 1, 1], [], []>} : vector<8x32xbf16>, vector<32x128xbf16>, vector<8x128xf32> -> vector<8x128xf32>
    %320 = vector.extract_strided_slice %17 {offsets = [48, 0], sizes = [8, 128], strides = [1, 1]} : vector<64x128xf32> to vector<8x128xf32>
    %321 = arith.addf %320, %317 : vector<8x128xf32>
    %322 = tpu.iota {dimensions = array<i32: 1>} : vector<8x128xi32>
    %c96_i32_63 = arith.constant 96 : i32
    %323 = vector.broadcast %c96_i32_63 : i32 to vector<8x128xi32>
    %324 = arith.cmpi slt, %322, %323 : vector<8x128xi32>
    %325 = arith.negf %321 : vector<8x128xf32>
    %326 = math.exp %325 : vector<8x128xf32>
    %cst_64 = arith.constant 1.000000e+00 : f32
    %327 = vector.broadcast %cst_64 : f32 to vector<8x128xf32>
    %328 = arith.addf %327, %326 : vector<8x128xf32>
    %329 = arith.divf %327, %328 : vector<8x128xf32>
    %330 = math.tanh %321 : vector<8x128xf32>
    %331 = arith.select %324, %329, %330 : vector<8x128xi1>, vector<8x128xf32>
    %332 = vector.extract_strided_slice %331 {offsets = [0, 0], sizes = [8, 32], strides = [1, 1]} : vector<8x128xf32> to vector<8x32xf32>
    %333 = vector.extract_strided_slice %331 {offsets = [0, 32], sizes = [8, 32], strides = [1, 1]} : vector<8x128xf32> to vector<8x32xf32>
    %334 = vector.extract_strided_slice %331 {offsets = [0, 64], sizes = [8, 32], strides = [1, 1]} : vector<8x128xf32> to vector<8x32xf32>
    %335 = vector.extract_strided_slice %331 {offsets = [0, 96], sizes = [8, 32], strides = [1, 1]} : vector<8x128xf32> to vector<8x32xf32>
    %336 = arith.mulf %333, %289 : vector<8x32xf32>
    %337 = arith.mulf %332, %335 : vector<8x32xf32>
    %338 = arith.addf %336, %337 : vector<8x32xf32>
    %339 = math.tanh %338 : vector<8x32xf32>
    %340 = arith.mulf %334, %339 : vector<8x32xf32>
    %341 = arith.truncf %340 : vector<8x32xf32> to vector<8x32xbf16>
    %cst_65 = arith.constant dense<0.000000e+00> : vector<8x128xf32>
    %342 = tpu.matmul %341, %2, %cst_65 {dimension_numbers = #tpu.dot_dimension_numbers<[1], [0], [0], [1], [0, 0, 1, 1], [], []>} : vector<8x32xbf16>, vector<32x128xbf16>, vector<8x128xf32> -> vector<8x128xf32>
    %343 = arith.addf %342, %319 : vector<8x128xf32>
    %344 = vector.broadcast %9 : vector<1x128xf32> to vector<8x128xf32>
    %345 = arith.addf %343, %344 : vector<8x128xf32>
    %346 = tpu.iota {dimensions = array<i32: 1>} : vector<8x128xi32>
    %c96_i32_66 = arith.constant 96 : i32
    %347 = vector.broadcast %c96_i32_66 : i32 to vector<8x128xi32>
    %348 = arith.cmpi slt, %346, %347 : vector<8x128xi32>
    %349 = arith.negf %345 : vector<8x128xf32>
    %350 = math.exp %349 : vector<8x128xf32>
    %cst_67 = arith.constant 1.000000e+00 : f32
    %351 = vector.broadcast %cst_67 : f32 to vector<8x128xf32>
    %352 = arith.addf %351, %350 : vector<8x128xf32>
    %353 = arith.divf %351, %352 : vector<8x128xf32>
    %354 = math.tanh %345 : vector<8x128xf32>
    %355 = arith.select %348, %353, %354 : vector<8x128xi1>, vector<8x128xf32>
    %356 = vector.extract_strided_slice %355 {offsets = [0, 0], sizes = [8, 32], strides = [1, 1]} : vector<8x128xf32> to vector<8x32xf32>
    %357 = vector.extract_strided_slice %355 {offsets = [0, 32], sizes = [8, 32], strides = [1, 1]} : vector<8x128xf32> to vector<8x32xf32>
    %358 = vector.extract_strided_slice %355 {offsets = [0, 64], sizes = [8, 32], strides = [1, 1]} : vector<8x128xf32> to vector<8x32xf32>
    %359 = vector.extract_strided_slice %355 {offsets = [0, 96], sizes = [8, 32], strides = [1, 1]} : vector<8x128xf32> to vector<8x32xf32>
    %360 = arith.mulf %357, %313 : vector<8x32xf32>
    %361 = arith.mulf %356, %359 : vector<8x32xf32>
    %362 = arith.addf %360, %361 : vector<8x32xf32>
    %363 = math.tanh %362 : vector<8x32xf32>
    %364 = arith.mulf %358, %363 : vector<8x32xf32>
    %365 = arith.truncf %340 : vector<8x32xf32> to vector<8x32xbf16>
    %cst_68 = arith.constant dense<0.000000e+00> : vector<8x128xf32>
    %366 = tpu.matmul %365, %1, %cst_68 {dimension_numbers = #tpu.dot_dimension_numbers<[1], [0], [0], [1], [0, 0, 1, 1], [], []>} : vector<8x32xbf16>, vector<32x128xbf16>, vector<8x128xf32> -> vector<8x128xf32>
    %367 = arith.truncf %364 : vector<8x32xf32> to vector<8x32xbf16>
    %cst_69 = arith.constant dense<0.000000e+00> : vector<8x128xf32>
    %368 = tpu.matmul %367, %3, %cst_69 {dimension_numbers = #tpu.dot_dimension_numbers<[1], [0], [0], [1], [0, 0, 1, 1], [], []>} : vector<8x32xbf16>, vector<32x128xbf16>, vector<8x128xf32> -> vector<8x128xf32>
    %369 = vector.extract_strided_slice %17 {offsets = [56, 0], sizes = [8, 128], strides = [1, 1]} : vector<64x128xf32> to vector<8x128xf32>
    %370 = arith.addf %369, %366 : vector<8x128xf32>
    %371 = tpu.iota {dimensions = array<i32: 1>} : vector<8x128xi32>
    %c96_i32_70 = arith.constant 96 : i32
    %372 = vector.broadcast %c96_i32_70 : i32 to vector<8x128xi32>
    %373 = arith.cmpi slt, %371, %372 : vector<8x128xi32>
    %374 = arith.negf %370 : vector<8x128xf32>
    %375 = math.exp %374 : vector<8x128xf32>
    %cst_71 = arith.constant 1.000000e+00 : f32
    %376 = vector.broadcast %cst_71 : f32 to vector<8x128xf32>
    %377 = arith.addf %376, %375 : vector<8x128xf32>
    %378 = arith.divf %376, %377 : vector<8x128xf32>
    %379 = math.tanh %370 : vector<8x128xf32>
    %380 = arith.select %373, %378, %379 : vector<8x128xi1>, vector<8x128xf32>
    %381 = vector.extract_strided_slice %380 {offsets = [0, 0], sizes = [8, 32], strides = [1, 1]} : vector<8x128xf32> to vector<8x32xf32>
    %382 = vector.extract_strided_slice %380 {offsets = [0, 32], sizes = [8, 32], strides = [1, 1]} : vector<8x128xf32> to vector<8x32xf32>
    %383 = vector.extract_strided_slice %380 {offsets = [0, 64], sizes = [8, 32], strides = [1, 1]} : vector<8x128xf32> to vector<8x32xf32>
    %384 = vector.extract_strided_slice %380 {offsets = [0, 96], sizes = [8, 32], strides = [1, 1]} : vector<8x128xf32> to vector<8x32xf32>
    %385 = arith.mulf %382, %338 : vector<8x32xf32>
    %386 = arith.mulf %381, %384 : vector<8x32xf32>
    %387 = arith.addf %385, %386 : vector<8x32xf32>
    %388 = math.tanh %387 : vector<8x32xf32>
    %389 = arith.mulf %383, %388 : vector<8x32xf32>
    %390 = arith.truncf %389 : vector<8x32xf32> to vector<8x32xbf16>
    %cst_72 = arith.constant dense<0.000000e+00> : vector<8x128xf32>
    %391 = tpu.matmul %390, %2, %cst_72 {dimension_numbers = #tpu.dot_dimension_numbers<[1], [0], [0], [1], [0, 0, 1, 1], [], []>} : vector<8x32xbf16>, vector<32x128xbf16>, vector<8x128xf32> -> vector<8x128xf32>
    %392 = arith.addf %391, %368 : vector<8x128xf32>
    %393 = vector.broadcast %9 : vector<1x128xf32> to vector<8x128xf32>
    %394 = arith.addf %392, %393 : vector<8x128xf32>
    %395 = tpu.iota {dimensions = array<i32: 1>} : vector<8x128xi32>
    %c96_i32_73 = arith.constant 96 : i32
    %396 = vector.broadcast %c96_i32_73 : i32 to vector<8x128xi32>
    %397 = arith.cmpi slt, %395, %396 : vector<8x128xi32>
    %398 = arith.negf %394 : vector<8x128xf32>
    %399 = math.exp %398 : vector<8x128xf32>
    %cst_74 = arith.constant 1.000000e+00 : f32
    %400 = vector.broadcast %cst_74 : f32 to vector<8x128xf32>
    %401 = arith.addf %400, %399 : vector<8x128xf32>
    %402 = arith.divf %400, %401 : vector<8x128xf32>
    %403 = math.tanh %394 : vector<8x128xf32>
    %404 = arith.select %397, %402, %403 : vector<8x128xi1>, vector<8x128xf32>
    %405 = vector.extract_strided_slice %404 {offsets = [0, 0], sizes = [8, 32], strides = [1, 1]} : vector<8x128xf32> to vector<8x32xf32>
    %406 = vector.extract_strided_slice %404 {offsets = [0, 32], sizes = [8, 32], strides = [1, 1]} : vector<8x128xf32> to vector<8x32xf32>
    %407 = vector.extract_strided_slice %404 {offsets = [0, 64], sizes = [8, 32], strides = [1, 1]} : vector<8x128xf32> to vector<8x32xf32>
    %408 = vector.extract_strided_slice %404 {offsets = [0, 96], sizes = [8, 32], strides = [1, 1]} : vector<8x128xf32> to vector<8x32xf32>
    %409 = arith.mulf %406, %362 : vector<8x32xf32>
    %410 = arith.mulf %405, %408 : vector<8x32xf32>
    %411 = arith.addf %409, %410 : vector<8x32xf32>
    %412 = math.tanh %411 : vector<8x32xf32>
    %413 = arith.mulf %407, %412 : vector<8x32xf32>
    %c0_75 = arith.constant 0 : index
    %c0_76 = arith.constant 0 : index
    %414 = vector.load %arg1[%c0_75, %c0_76] : memref<8x16xf32, #tpu.memory_space<vmem>>, vector<8x16xf32>
    %415 = arith.truncf %414 : vector<8x16xf32> to vector<8x16xbf16>
    %416 = arith.truncf %413 : vector<8x32xf32> to vector<8x32xbf16>
    %cst_77 = arith.constant dense<0.000000e+00> : vector<8x32xf32>
    %417 = tpu.matmul %416, %4, %cst_77 {dimension_numbers = #tpu.dot_dimension_numbers<[1], [0], [0], [1], [0, 0, 1, 1], [], []>} : vector<8x32xbf16>, vector<32x32xbf16>, vector<8x32xf32> -> vector<8x32xf32>
    %cst_78 = arith.constant dense<0.000000e+00> : vector<8x32xf32>
    %418 = tpu.matmul %415, %5, %cst_78 {dimension_numbers = #tpu.dot_dimension_numbers<[1], [0], [0], [1], [0, 0, 1, 1], [], []>} : vector<8x16xbf16>, vector<16x32xbf16>, vector<8x32xf32> -> vector<8x32xf32>
    %419 = arith.addf %417, %418 : vector<8x32xf32>
    %420 = vector.broadcast %10 : vector<1x32xf32> to vector<8x32xf32>
    %421 = arith.addf %419, %420 : vector<8x32xf32>
    %cst_79 = arith.constant 0.000000e+00 : f32
    %422 = vector.broadcast %cst_79 : f32 to vector<8x32xf32>
    %423 = arith.maximumf %421, %422 : vector<8x32xf32>
    %424 = arith.truncf %423 : vector<8x32xf32> to vector<8x32xbf16>
    %cst_80 = arith.constant dense<0.000000e+00> : vector<8x32xf32>
    %425 = tpu.matmul %424, %6, %cst_80 {dimension_numbers = #tpu.dot_dimension_numbers<[1], [0], [0], [1], [0, 0, 1, 1], [], []>} : vector<8x32xbf16>, vector<32x32xbf16>, vector<8x32xf32> -> vector<8x32xf32>
    %426 = vector.broadcast %11 : vector<1x32xf32> to vector<8x32xf32>
    %427 = arith.addf %425, %426 : vector<8x32xf32>
    %cst_81 = arith.constant 0.000000e+00 : f32
    %428 = vector.broadcast %cst_81 : f32 to vector<8x32xf32>
    %429 = arith.maximumf %427, %428 : vector<8x32xf32>
    %430 = arith.truncf %429 : vector<8x32xf32> to vector<8x32xbf16>
    %cst_82 = arith.constant dense<0.000000e+00> : vector<8x128xf32>
    %431 = tpu.matmul %430, %7, %cst_82 {dimension_numbers = #tpu.dot_dimension_numbers<[1], [0], [0], [1], [0, 0, 1, 1], [], []>} : vector<8x32xbf16>, vector<32x128xbf16>, vector<8x128xf32> -> vector<8x128xf32>
    %432 = vector.broadcast %12 : vector<1x128xf32> to vector<8x128xf32>
    %433 = arith.addf %431, %432 : vector<8x128xf32>
    %c0_83 = arith.constant 0 : index
    %c0_84 = arith.constant 0 : index
    %434 = vector.load %arg4[%c0_83, %c0_84] : memref<8x128xf32, #tpu.memory_space<vmem>>, vector<8x128xf32>
    tpu.vector_store %arg4[%c0_83, %c0_84], %433 {strides = array<i32>} : memref<8x128xf32, #tpu.memory_space<vmem>>, vector<8x128xf32>,
    return
  }
}

</mosaic_0001>

<bundles_post_ra>
// kernel: tpu_custom_call.1
= control target key start
LH: loop header
LB: loop body
LE: loop exit
PB: predicated region body
PF: predicated region fallthrough
CT: control target
= control target key end

     0   :  { %9 = vsyncpa [#allocation3], 0  ;;  %s2022_s0 = inlined_call_operand.vmem [shape: f32[64,16], index: 0, kind: input, shape index: {}]   ;;  %s2023_s1 = inlined_call_operand.vmem [shape: f32[8,16], index: 1, kind: input, shape index: {}]   ;;  %s2024_s2 = inlined_call_operand.hbm [shape: bf16[224,128], index: 2, kind: input, shape index: {}]   ;;  %s2025_s3 = inlined_call_operand.vmem [shape: f32[8,128], index: 3, kind: input, shape index: {}]   ;;  %s2026_s4 = inlined_call_operand.hbm [shape: f32[8,128], index: 4, kind: output, shape index: {}]  }
   0x1   :  { %10 = vsyncpa [#allocation4], 0  ;;  %s19_s17 = sshll.u32 %s2024_s2, 4  ;;  %s1661_s18 = smov [#allocation2]   ;;  %s20_s17 = int_to_ptr.hbm [resolvable:$true] %s19_s17 }
   0x2   :  { %s21_s19 = sshll.u32 %s1661_s18, 4  ;;  %s1662_s20 = smov 64   ;;  %s22_s19 = int_to_ptr.vmem [resolvable:$true] %s21_s19 }
   0x3   :  { %s1663_s21 = smov 4  }
   0x4   :  { %27 = dma.hbm_to_vmem [thread:$0]  %s20_s17, 1792, %s22_s19, [#allocation3], %s1662_s20, %s1662_s20, %s1663_s21  }
   0x5   :  { %1657 = dma.done.wait [#allocation3], 1792  }
   0x6   :  { %1658 = vsyncadd [#allocation3], 4294965504  ;;  %v1454_v0 = vld [vmem:[#allocation2] sm:$0xff]  ;;  %v1697_v1 = vld [vmem:[#allocation2 + $0x10] sm:$0xff]  ;;  %vm87_vm0 = vcmask 130048   ;;  %v1664_v6 = vmov 0   ;;  %v184_v17 = vlaneseq }
   0x7   :  { %v68_v2 = vld [vmem:[%s2022_s0] sm:$0xff]  ;;  %v69_v3 = vld [vmem:[%s2022_s0 + $0x8] sm:$0xff]  ;;  %107 = vmatpush.bf16.msra.mxu0 %v1454_v0  ;;  %151 = vmatpush.bf16.msra.mxu1 %v1697_v1  ;;  %s1665_s27 = smov 32   ;;  %v1733_v36 = vld [vmem:[#allocation2 + $0x30] sm:$0xff]  ;;  %vm141_vm6 = vcmask 261120   ;;  %s1666_s25 = smov [#allocation5]  }
   0x8   :  { %v76_v4 = vpack.c.bf16 %v69_v3, %v68_v2  ;;  %v1706_v5 = vld [vmem:[#allocation2 + $0x8] sm:$0xff]  ;;  %v1719_v7 = vld [vmem:[%s2025_s3] ss:$0 sm:$0xff]  ;;  %v1722_v20 = vand.u32 127, %v184_v17  ;;  %176 = vmatpush.bf16.msra.mxu2 %v1733_v36  ;;  %v1741_v39 = vld [vmem:[#allocation2 + $0x18] sm:$0xff]  ;;  %s1340_s26 = sshll.u32 %s1666_s25, 4  ;;  %s1341_s26 = int_to_ptr.vmem [resolvable:$true] %s1340_s26 }
   0x9   :  { %v1735_v37 = vld [vmem:[#allocation2 + $0x20] sm:$0xff]  ;;  %v1738_v38 = vld [vmem:[#allocation2 + $0x28] sm:$0xff]  ;;  %s1342_s29 = sshll.u32 %s2026_s4, 4  ;;  %s1343_s29 = int_to_ptr.hbm [resolvable:$true] %s1342_s29 }
   0xa   :  { %1356 = vmatmul.msk.bf16.vlgmr.msra.gmra.mxu0 %vm87_vm0, %v76_v4  ;;  %vm186_vm3 = vcmp.lt.s32.totalorder %v1722_v20, 96  ;;  %250 = vmatpush.bf16.msra.mxu3 %v1735_v37  ;;  %v1764_v51 = vld [vmem:[%s2025_s3 + $0x1] ss:$0 sm:$0xff] }
   0xb   :  { %696 = vmatpush.bf16.msrb.mxu0 %v1697_v1  ;;  %152 = vmatpush.bf16.msra.mxu1 %v1706_v5  ;;  %v1214_v20 = vld [vmem:[%s2023_s1] sm:$0xff] }
   0xc   :  { %177 = vmatpush.bf16.msra.mxu2 %v1738_v38 }
   0xe   :  { %153 = vmatmul.bf16.vlgmr.msra.gmra.mxu1 %v1664_v6  ;;  %251 = vmatpush.bf16.msra.mxu3 %v1741_v39 }
   0xf   :  { %303 = vmatpush.bf16.msrb.mxu1 %v1697_v1  ;;  %697 = vmatpush.bf16.msrb.mxu0 %v1706_v5 }
  0x10   :  { %323 = vmatpush.bf16.msrb.mxu2 %v1733_v36 }
  0x11   :  { %178 = vmatmul.bf16.vlgmr.msra.gmra.mxu2 %v1664_v6 }
  0x12   :  { %382 = vmatpush.bf16.msrb.mxu3 %v1735_v37 }
  0x13   :  { %304 = vmatpush.bf16.msrb.mxu1 %v1706_v5  ;;  %847 = vmatpush.bf16.msra.mxu0 %v1733_v36 }
  0x14   :  { %324 = vmatpush.bf16.msrb.mxu2 %v1738_v38 }
  0x16   :  { %383 = vmatpush.bf16.msrb.mxu3 %v1741_v39 }
  0x17   :  { %434 = vmatpush.bf16.msra.mxu1 %v1697_v1  ;;  %848 = vmatpush.bf16.msra.mxu0 %v1738_v38 }
  0x18   :  { %454 = vmatpush.bf16.msra.mxu2 %v1733_v36 }
  0x1b   :  { %435 = vmatpush.bf16.msra.mxu1 %v1706_v5 }
  0x1c   :  { %455 = vmatpush.bf16.msra.mxu2 %v1738_v38 }
  0x87   :  { %v109_v8 = vpop.f32.mrf.mxu0 }
  0x88   :  { %v110_v9 = vadd.f32 %v1719_v7, %v109_v8 }
  0x8b   :  { %v154_v10 = vpop.f32.mrf.mxu1 }
  0x8c   :  { %v183_v11 = vadd.f32 %v154_v10, %v110_v9 }
  0x8e   :  { %v1376_v12 = vmul.f32 -1.442695, %v183_v11 }
  0x8f   :  { %v111_v46 = vpop.f32.mrf.mxu0 }
  0x90   :  { %1479 = vpow2.f32 %v1376_v12  ;;  %v112_v47 = vadd.f32 %v1719_v7, %v111_v46  ;;  %v71_v46 = vld [vmem:[%s2022_s0 + $0x18] sm:$0xff] }
  0x93   :  { %v156_v13 = vpop.f32.mrf.mxu1 }
  0x94   :  { %v179_v43 = vpop.f32.mrf.mxu2 }
  0x96   :  { %v1480_v14 = vpop.eup %1479 }
  0x97   :  { %v190_v15 = vadd.f32 1.0, %v1480_v14 }
  0x99   :  { %1481 = vrcp.f32 %v190_v15  ;;  %v202_v21 = vand.u32 2147483648, %v190_v15  ;;  %v200_v23 = vand.u32 2147483647, %v190_v15  ;;  %vm196_vm2 = vweird.f32 %v190_v15 }
  0x9a   :  { %1483 = vtanh.f32 %v183_v11 }
  0x9b   :  { %v203_v25 = vor.u32 1.1754944e-38, %v202_v21  ;;  %vm201_vm5 = vcmp.eq.f32.partialorder %v200_v23, 8.507059e+37 }
  0x9c   :  { %v181_v45 = vpop.f32.mrf.mxu2 }
  0x9f   :  { %v1482_v16 = vpop.eup %1481 }
  0xa0   :  { %v192_v18 = vmul.f32 %v1482_v16, %v190_v15  ;;  %vm197_vm1 = vweird.f32 %v1482_v16  ;;  %v1484_v27 = vpop.eup %1483 }
  0xa1   :  { %vm198_vm4 = vmor %vm196_vm2, %vm197_vm1 }
  0xa2   :  { %v193_v19 = vsub.f32 1.0, %v192_v18 }
  0xa4   :  { %v194_v22 = vmul.f32 %v1482_v16, %v193_v19 }
  0xa6   :  { %v195_v24 = vadd.f32 %v1482_v16, %v194_v22 }
  0xa8   :  { %v199_v26 = vsel %vm198_vm4, %v1482_v16, %v195_v24 }
  0xa9   :  { %v204_v28 = vsel %vm201_vm5, %v203_v25, %v199_v26 }
  0xaa   :  { %v207_v29 = vsel %vm186_vm3, %v204_v28, %v1484_v27 }
  0xab   :  { %210 = vrot.lane.b32.xlu0 %v207_v29, %s1665_s27  ;;  %v208_v32 = vmul.f32 0.0, %v207_v29 }
 0x11d   :  { %v211_v30 = vpop.permute.xlu0 %210 }
 0x11e   :  { %v213_v31 = vmul.f32 %v211_v30, %v207_v29 }
 0x120   :  { %215 = vrot.lane.b32.xlu0 %v213_v31, %s1665_s27 }
 0x192   :  { %v216_v33 = vpop.permute.xlu0 %215 }
 0x193   :  { %v1729_v34 = vadd.f32 %v216_v33, %v208_v32 }
 0x195   :  { %1485 = vtanh.f32 %v1729_v34 }
 0x19b   :  { %v1486_v35 = vpop.eup %1485 }
 0x19c   :  { %221 = vrot.lane.b32.xlu1 %v1486_v35, %s1665_s27 }
 0x20e   :  { %v222_v40 = vpop.permute.xlu1 %221 }
 0x20f   :  { %v224_v41 = vmul.f32 %v222_v40, %v207_v29 }
 0x211   :  { %v225_v42 = vpack.c.bf16 %v224_v41, %v224_v41 }
 0x213   :  { %227 = vrot.lane.b32.xlu1 %v225_v42, %s1662_s20 }
 0x285   :  { %v228_v44 = vpop.permute.xlu1 %227 }
 0x286   :  { %1385 = vmatmul.msk.bf16.vlgmr.msra.gmra.mxu3 %vm141_vm6, %v228_v44  ;;  %1387 = vmatmul.msk.bf16.vlgmr.msrb.gmra.mxu1 %vm141_vm6, %v228_v44 }
 0x287   :  { %565 = vmatpush.bf16.msrb.mxu1 %v1697_v1  ;;  %513 = vmatpush.bf16.msra.mxu3 %v1735_v37 }
 0x28b   :  { %566 = vmatpush.bf16.msrb.mxu1 %v1706_v5  ;;  %514 = vmatpush.bf16.msra.mxu3 %v1741_v39 }
 0x303   :  { %v306_v48 = vpop.f32.mrf.mxu1 }
 0x304   :  { %v330_v49 = vadd.f32 %v306_v48, %v112_v47 }
 0x306   :  { %v1389_v50 = vmul.f32 -1.442695, %v330_v49 }
 0x308   :  { %1487 = vpow2.f32 %v1389_v50 }
 0x309   :  { %v253_v52 = vpop.f32.mrf.mxu3 }
 0x30a   :  { %v254_v53 = vadd.f32 %v253_v52, %v179_v43 }
 0x30b   :  { %v308_v54 = vpop.f32.mrf.mxu1 }
 0x30c   :  { %v258_v55 = vadd.f32 %v1764_v51, %v254_v53 }
 0x30e   :  { %v1488_v56 = vpop.eup %1487  ;;  %v1386_v57 = vmul.f32 -1.442695, %v258_v55 }
 0x30f   :  { %v334_v58 = vadd.f32 1.0, %v1488_v56 }
 0x310   :  { %1489 = vpow2.f32 %v1386_v57 }
 0x311   :  { %v255_v59 = vpop.f32.mrf.mxu3  ;;  %1491 = vrcp.f32 %v334_v58  ;;  %v346_v17 = vand.u32 2147483648, %v334_v58  ;;  %vm340_vm12 = vweird.f32 %v334_v58  ;;  %v344_v19 = vand.u32 2147483647, %v334_v58 }
 0x313   :  { %v347_v22 = vor.u32 1.1754944e-38, %v346_v17  ;;  %vm345_vm14 = vcmp.eq.f32.partialorder %v344_v19, 8.507059e+37 }
 0x316   :  { %v1490_v60 = vpop.eup %1489 }
 0x317   :  { %v262_v61 = vadd.f32 1.0, %v1490_v60  ;;  %v1492_v62 = vpop.eup %1491 }
 0x318   :  { %v336_v63 = vmul.f32 %v1492_v62, %v334_v58  ;;  %vm341_vm11 = vweird.f32 %v1492_v62 }
 0x319   :  { %1493 = vrcp.f32 %v262_v61  ;;  %v274_v6 = vand.u32 2147483648, %v262_v61  ;;  %v272_v9 = vand.u32 2147483647, %v262_v61  ;;  %vm268_vm8 = vweird.f32 %v262_v61  ;;  %vm342_vm13 = vmor %vm340_vm12, %vm341_vm11 }
 0x31a   :  { %v337_v3 = vsub.f32 1.0, %v336_v63  ;;  %1495 = vtanh.f32 %v258_v55 }
 0x31b   :  { %v275_v12 = vor.u32 1.1754944e-38, %v274_v6  ;;  %vm273_vm10 = vcmp.eq.f32.partialorder %v272_v9, 8.507059e+37  ;;  %1497 = vtanh.f32 %v330_v49 }
 0x31c   :  { %v338_v10 = vmul.f32 %v1492_v62, %v337_v3 }
 0x31e   :  { %v339_v14 = vadd.f32 %v1492_v62, %v338_v10 }
 0x31f   :  { %v1494_v0 = vpop.eup %1493 }
 0x320   :  { %v264_v2 = vmul.f32 %v1494_v0, %v262_v61  ;;  %vm269_vm7 = vweird.f32 %v1494_v0  ;;  %v1496_v15 = vpop.eup %1495  ;;  %v343_v21 = vsel %vm342_vm13, %v1492_v62, %v339_v14 }
 0x321   :  { %vm270_vm9 = vmor %vm268_vm8, %vm269_vm7  ;;  %v348_v23 = vsel %vm345_vm14, %v347_v22, %v343_v21  ;;  %v1498_v24 = vpop.eup %1497 }
 0x322   :  { %v265_v4 = vsub.f32 1.0, %v264_v2  ;;  %v351_v25 = vsel %vm186_vm3, %v348_v23, %v1498_v24 }
 0x323   :  { %v352_v33 = vmul.f32 %v351_v25, %v1729_v34  ;;  %v70_v34 = vld [vmem:[%s2022_s0 + $0x10] sm:$0xff] }
 0x324   :  { %v266_v8 = vmul.f32 %v1494_v0, %v265_v4  ;;  %v77_v47 = vpack.c.bf16 %v71_v46, %v70_v34 }
 0x326   :  { %v267_v11 = vadd.f32 %v1494_v0, %v266_v8  ;;  %1357 = vmatmul.msk.bf16.gmra.mxu0 %vm87_vm0, %v77_v47 }
 0x328   :  { %v271_v13 = vsel %vm270_vm9, %v1494_v0, %v267_v11 }
 0x329   :  { %v276_v16 = vsel %vm273_vm10, %v275_v12, %v271_v13 }
 0x32a   :  { %v279_v18 = vsel %vm186_vm3, %v276_v16, %v1496_v15 }
 0x32b   :  { %282 = vrot.lane.b32.xlu2 %v279_v18, %s1665_s27  ;;  %v280_v30 = vmul.f32 0.0, %v279_v18 }
 0x333   :  { %354 = vrot.lane.b32.xlu2 %v351_v25, %s1665_s27 }
 0x385   :  { %v283_v26 = vpop.permute.xlu2 %282 }
 0x386   :  { %v285_v27 = vmul.f32 %v283_v26, %v279_v18 }
 0x388   :  { %287 = vrot.lane.b32.xlu0 %v285_v27, %s1665_s27 }
 0x38d   :  { %v355_v28 = vpop.permute.xlu2 %354 }
 0x38e   :  { %v357_v29 = vmul.f32 %v355_v28, %v351_v25 }
 0x390   :  { %359 = vrot.lane.b32.xlu1 %v357_v29, %s1665_s27 }
 0x3a3   :  { %v114_v54 = vpop.f32.mrf.mxu0 }
 0x3a4   :  { %v115_v55 = vadd.f32 %v1719_v7, %v114_v54 }
 0x3fa   :  { %v288_v31 = vpop.permute.xlu0 %287 }
 0x3fb   :  { %v1775_v32 = vadd.f32 %v288_v31, %v280_v30 }
 0x3fd   :  { %1499 = vtanh.f32 %v1775_v32 }
 0x402   :  { %v360_v35 = vpop.permute.xlu1 %359 }
 0x403   :  { %v1500_v40 = vpop.eup %1499  ;;  %v1779_v41 = vadd.f32 %v360_v35, %v352_v33 }
 0x404   :  { %293 = vrot.lane.b32.xlu2 %v1500_v40, %s1665_s27 }
 0x405   :  { %1501 = vtanh.f32 %v1779_v41 }
 0x40b   :  { %v1502_v42 = vpop.eup %1501 }
 0x40c   :  { %365 = vrot.lane.b32.xlu0 %v1502_v42, %s1665_s27 }
 0x45e   :  { %v294_v43 = vpop.permute.xlu2 %293 }
 0x45f   :  { %v296_v44 = vmul.f32 %v294_v43, %v279_v18 }
 0x461   :  { %v310_v45 = vpack.c.bf16 %v296_v44, %v296_v44 }
 0x463   :  { %312 = vrot.lane.b32.xlu1 %v310_v45, %s1662_s20 }
 0x47e   :  { %v366_v48 = vpop.permute.xlu0 %365 }
 0x47f   :  { %v368_v49 = vmul.f32 %v366_v48, %v351_v25 }
 0x481   :  { %v369_v50 = vpack.c.bf16 %v368_v49, %v368_v49 }
 0x483   :  { %371 = vrot.lane.b32.xlu2 %v369_v50, %s1662_s20 }
 0x4d5   :  { %v313_v52 = vpop.permute.xlu1 %312 }
 0x4d6   :  { %1388 = vmatmul.msk.bf16.vlgmr.msrb.gmra.mxu2 %vm141_vm6, %v313_v52 }
 0x4d7   :  { %585 = vmatpush.bf16.msrb.mxu2 %v1733_v36 }
 0x4db   :  { %586 = vmatpush.bf16.msrb.mxu2 %v1738_v38 }
 0x4dd   :  { %v372_v53 = vpop.permute.xlu2 %371 }
 0x4de   :  { %1390 = vmatmul.msk.bf16.vlgmr.msrb.gmra.mxu3 %vm141_vm6, %v372_v53  ;;  %1392 = vmatmul.msk.bf16.vlgmr.msra.gmra.mxu1 %vm141_vm6, %v372_v53 }
 0x4df   :  { %644 = vmatpush.bf16.msrb.mxu3 %v1735_v37  ;;  %716 = vmatpush.bf16.msra.mxu1 %v1733_v36 }
 0x4e3   :  { %645 = vmatpush.bf16.msrb.mxu3 %v1741_v39  ;;  %717 = vmatpush.bf16.msra.mxu1 %v1738_v38 }
 0x559   :  { %v326_v56 = vpop.f32.mrf.mxu2 }
 0x55b   :  { %v437_v57 = vpop.f32.mrf.mxu1 }
 0x55c   :  { %v461_v58 = vadd.f32 %v437_v57, %v115_v55 }
 0x55e   :  { %v1394_v59 = vmul.f32 -1.442695, %v461_v58 }
 0x560   :  { %1503 = vpow2.f32 %v1394_v59 }
 0x561   :  { %v328_v60 = vpop.f32.mrf.mxu2  ;;  %v385_v61 = vpop.f32.mrf.mxu3 }
 0x562   :  { %v386_v62 = vadd.f32 %v385_v61, %v326_v56  ;;  %v116_v60 = vpop.f32.mrf.mxu0 }
 0x563   :  { %v439_v63 = vpop.f32.mrf.mxu1  ;;  %v117_v61 = vadd.f32 %v1719_v7, %v116_v60  ;;  %v73_v60 = vld [vmem:[%s2022_s0 + $0x28] sm:$0xff] }
 0x564   :  { %v389_v0 = vadd.f32 %v1764_v51, %v386_v62 }
 0x566   :  { %v1504_v2 = vpop.eup %1503  ;;  %v1391_v3 = vmul.f32 -1.442695, %v389_v0 }
 0x567   :  { %v465_v4 = vadd.f32 1.0, %v1504_v2 }
 0x568   :  { %1505 = vpow2.f32 %v1391_v3 }
 0x569   :  { %1507 = vrcp.f32 %v465_v4  ;;  %v387_v6 = vpop.f32.mrf.mxu3  ;;  %v477_v13 = vand.u32 2147483648, %v465_v4  ;;  %v475_v15 = vand.u32 2147483647, %v465_v4  ;;  %vm471_vm1 = vweird.f32 %v465_v4 }
 0x56b   :  { %v478_v18 = vor.u32 1.1754944e-38, %v477_v13  ;;  %vm476_vm4 = vcmp.eq.f32.partialorder %v475_v15, 8.507059e+37 }
 0x56e   :  { %v1506_v8 = vpop.eup %1505 }
 0x56f   :  { %v1508_v9 = vpop.eup %1507  ;;  %v393_v10 = vadd.f32 1.0, %v1506_v8 }
 0x570   :  { %v467_v11 = vmul.f32 %v1508_v9, %v465_v4  ;;  %vm472_vm15 = vweird.f32 %v1508_v9 }
 0x571   :  { %1509 = vrcp.f32 %v393_v10  ;;  %vm473_vm2 = vmor %vm471_vm1, %vm472_vm15  ;;  %v405_v26 = vand.u32 2147483648, %v393_v10  ;;  %v403_v28 = vand.u32 2147483647, %v393_v10  ;;  %vm399_vm7 = vweird.f32 %v393_v10 }
 0x572   :  { %v468_v12 = vsub.f32 1.0, %v467_v11  ;;  %1511 = vtanh.f32 %v461_v58 }
 0x573   :  { %1513 = vtanh.f32 %v389_v0  ;;  %v406_v30 = vor.u32 1.1754944e-38, %v405_v26  ;;  %vm404_vm9 = vcmp.eq.f32.partialorder %v403_v28, 8.507059e+37 }
 0x574   :  { %v469_v14 = vmul.f32 %v1508_v9, %v468_v12 }
 0x576   :  { %v470_v16 = vadd.f32 %v1508_v9, %v469_v14 }
 0x577   :  { %v1510_v17 = vpop.eup %1509 }
 0x578   :  { %v474_v19 = vsel %vm473_vm2, %v1508_v9, %v470_v16  ;;  %v395_v21 = vmul.f32 %v1510_v17, %v393_v10  ;;  %v1512_v22 = vpop.eup %1511  ;;  %vm400_vm5 = vweird.f32 %v1510_v17 }
 0x579   :  { %v479_v23 = vsel %vm476_vm4, %v478_v18, %v474_v19  ;;  %vm401_vm8 = vmor %vm399_vm7, %vm400_vm5  ;;  %v1514_v33 = vpop.eup %1513 }
 0x57a   :  { %v482_v24 = vsel %vm186_vm3, %v479_v23, %v1512_v22  ;;  %v396_v25 = vsub.f32 1.0, %v395_v21 }
 0x57b   :  { %485 = vrot.lane.b32.xlu1 %v482_v24, %s1665_s27  ;;  %v483_v49 = vmul.f32 %v482_v24, %v1779_v41 }
 0x57c   :  { %v397_v27 = vmul.f32 %v1510_v17, %v396_v25 }
 0x57e   :  { %v398_v29 = vadd.f32 %v1510_v17, %v397_v27 }
 0x580   :  { %v402_v31 = vsel %vm401_vm8, %v1510_v17, %v398_v29 }
 0x581   :  { %v407_v35 = vsel %vm404_vm9, %v406_v30, %v402_v31 }
 0x582   :  { %v410_v40 = vsel %vm186_vm3, %v407_v35, %v1514_v33 }
 0x583   :  { %413 = vrot.lane.b32.xlu0 %v410_v40, %s1665_s27  ;;  %v411_v34 = vmul.f32 %v410_v40, %v1775_v32 }
 0x5ed   :  { %v486_v42 = vpop.permute.xlu1 %485 }
 0x5ee   :  { %v488_v43 = vmul.f32 %v486_v42, %v482_v24 }
 0x5f0   :  { %490 = vrot.lane.b32.xlu0 %v488_v43, %s1665_s27 }
 0x5f5   :  { %v414_v44 = vpop.permute.xlu0 %413 }
 0x5f6   :  { %v416_v45 = vmul.f32 %v414_v44, %v410_v40 }
 0x5f8   :  { %418 = vrot.lane.b32.xlu2 %v416_v45, %s1665_s27 }
 0x652   :  { %v419_v46 = vpop.permute.xlu2 %418 }
 0x653   :  { %v1813_v47 = vadd.f32 %v419_v46, %v411_v34 }
 0x655   :  { %1515 = vtanh.f32 %v1813_v47 }
 0x65b   :  { %v1516_v48 = vpop.eup %1515 }
 0x65c   :  { %424 = vrot.lane.b32.xlu1 %v1516_v48, %s1665_s27 }
 0x662   :  { %v491_v50 = vpop.permute.xlu0 %490 }
 0x663   :  { %v1818_v52 = vadd.f32 %v491_v50, %v483_v49 }
 0x665   :  { %1517 = vtanh.f32 %v1818_v52 }
 0x66b   :  { %v1518_v53 = vpop.eup %1517 }
 0x66c   :  { %496 = vrot.lane.b32.xlu2 %v1518_v53, %s1665_s27 }
 0x6c6   :  { %v497_v54 = vpop.permute.xlu2 %496 }
 0x6c7   :  { %v499_v32 = vmul.f32 %v497_v54, %v482_v24 }
 0x6c9   :  { %v500_v55 = vpack.c.bf16 %v499_v32, %v499_v32 }
 0x6cb   :  { %502 = vrot.lane.b32.xlu1 %v500_v55, %s1662_s20 }
 0x6ce   :  { %v425_v56 = vpop.permute.xlu1 %424 }
 0x6cf   :  { %v427_v57 = vmul.f32 %v425_v56, %v410_v40 }
 0x6d1   :  { %v441_v58 = vpack.c.bf16 %v427_v57, %v427_v57 }
 0x6d3   :  { %443 = vrot.lane.b32.xlu0 %v441_v58, %s1662_s20 }
 0x73d   :  { %v503_v59 = vpop.permute.xlu1 %502 }
 0x73e   :  { %1395 = vmatmul.msk.bf16.vlgmr.msra.gmra.mxu3 %vm141_vm6, %v503_v59  ;;  %1397 = vmatmul.msk.bf16.vlgmr.msrb.gmra.mxu1 %vm141_vm6, %v503_v59 }
 0x73f   :  { %827 = vmatpush.bf16.msra.mxu3 %v1697_v1  ;;  %906 = vmatpush.bf16.msrb.mxu1 %v1735_v37 }
 0x743   :  { %828 = vmatpush.bf16.msra.mxu3 %v1706_v5  ;;  %907 = vmatpush.bf16.msrb.mxu1 %v1741_v39 }
 0x745   :  { %v444_v41 = vpop.permute.xlu0 %443 }
 0x746   :  { %1393 = vmatmul.msk.bf16.vlgmr.msra.gmra.mxu2 %vm141_vm6, %v444_v41 }
 0x747   :  { %775 = vmatpush.bf16.msra.mxu2 %v1735_v37 }
 0x74b   :  { %776 = vmatpush.bf16.msra.mxu2 %v1741_v39 }
 0x7bb   :  { %v568_v62 = vpop.f32.mrf.mxu1 }
 0x7bc   :  { %v592_v63 = vadd.f32 %v568_v62, %v117_v61 }
 0x7be   :  { %v1399_v0 = vmul.f32 -1.442695, %v592_v63 }
 0x7c0   :  { %1519 = vpow2.f32 %v1399_v0  ;;  %v75_v0 = vld [vmem:[%s2022_s0 + $0x38] sm:$0xff] }
 0x7c1   :  { %v516_v2 = vpop.f32.mrf.mxu3 }
 0x7c3   :  { %v570_v3 = vpop.f32.mrf.mxu1 }
 0x7c6   :  { %v1520_v4 = vpop.eup %1519 }
 0x7c7   :  { %v596_v6 = vadd.f32 1.0, %v1520_v4 }
 0x7c9   :  { %1521 = vrcp.f32 %v596_v6  ;;  %v457_v8 = vpop.f32.mrf.mxu2  ;;  %v518_v9 = vpop.f32.mrf.mxu3  ;;  %v608_v17 = vand.u32 2147483648, %v596_v6  ;;  %v606_v19 = vand.u32 2147483647, %v596_v6  ;;  %vm602_vm11 = vweird.f32 %v596_v6 }
 0x7ca   :  { %v517_v10 = vadd.f32 %v516_v2, %v457_v8 }
 0x7cb   :  { %v609_v24 = vor.u32 1.1754944e-38, %v608_v17  ;;  %vm607_vm13 = vcmp.eq.f32.partialorder %v606_v19, 8.507059e+37 }
 0x7cc   :  { %v520_v11 = vadd.f32 %v1764_v51, %v517_v10 }
 0x7ce   :  { %v1396_v12 = vmul.f32 -1.442695, %v520_v11 }
 0x7cf   :  { %v1522_v13 = vpop.eup %1521 }
 0x7d0   :  { %1523 = vpow2.f32 %v1396_v12  ;;  %v598_v14 = vmul.f32 %v1522_v13, %v596_v6  ;;  %vm603_vm10 = vweird.f32 %v1522_v13 }
 0x7d1   :  { %v459_v15 = vpop.f32.mrf.mxu2  ;;  %1525 = vtanh.f32 %v592_v63  ;;  %vm604_vm12 = vmor %vm602_vm11, %vm603_vm10  ;;  %v74_v63 = vld [vmem:[%s2022_s0 + $0x30] sm:$0xff] }
 0x7d2   :  { %v599_v16 = vsub.f32 1.0, %v598_v14  ;;  %v79_v3 = vpack.c.bf16 %v75_v0, %v74_v63 }
 0x7d4   :  { %v600_v18 = vmul.f32 %v1522_v13, %v599_v16 }
 0x7d6   :  { %v1524_v21 = vpop.eup %1523  ;;  %v601_v22 = vadd.f32 %v1522_v13, %v600_v18 }
 0x7d7   :  { %v524_v23 = vadd.f32 1.0, %v1524_v21  ;;  %v1526_v26 = vpop.eup %1525 }
 0x7d8   :  { %v605_v25 = vsel %vm604_vm12, %v1522_v13, %v601_v22 }
 0x7d9   :  { %1527 = vrcp.f32 %v524_v23  ;;  %v610_v27 = vsel %vm607_vm13, %v609_v24, %v605_v25  ;;  %v536_v33 = vand.u32 2147483648, %v524_v23  ;;  %v534_v40 = vand.u32 2147483647, %v524_v23 }
 0x7da   :  { %v613_v28 = vsel %vm186_vm3, %v610_v27, %v1526_v26  ;;  %1529 = vtanh.f32 %v520_v11  ;;  %vm530_vm15 = vweird.f32 %v524_v23 }
 0x7db   :  { %616 = vrot.lane.b32.xlu0 %v613_v28, %s1665_s27  ;;  %v537_v43 = vor.u32 1.1754944e-38, %v536_v33  ;;  %vm535_vm2 = vcmp.eq.f32.partialorder %v534_v40, 8.507059e+37  ;;  %v614_v54 = vmul.f32 %v613_v28, %v1818_v52  ;;  %v72_v52 = vld [vmem:[%s2022_s0 + $0x20] sm:$0xff] }
 0x7dc   :  { %v78_v61 = vpack.c.bf16 %v73_v60, %v72_v52 }
 0x7de   :  { %1358 = vmatmul.msk.bf16.gmra.mxu0 %vm87_vm0, %v78_v61 }
 0x7df   :  { %v1528_v29 = vpop.eup %1527 }
 0x7e0   :  { %v526_v30 = vmul.f32 %v1528_v29, %v524_v23  ;;  %vm531_vm14 = vweird.f32 %v1528_v29  ;;  %v1530_v45 = vpop.eup %1529 }
 0x7e1   :  { %vm532_vm1 = vmor %vm530_vm15, %vm531_vm14 }
 0x7e2   :  { %v527_v31 = vsub.f32 1.0, %v526_v30 }
 0x7e4   :  { %v528_v35 = vmul.f32 %v1528_v29, %v527_v31 }
 0x7e6   :  { %v529_v42 = vadd.f32 %v1528_v29, %v528_v35 }
 0x7e8   :  { %v533_v44 = vsel %vm532_vm1, %v1528_v29, %v529_v42 }
 0x7e9   :  { %v538_v34 = vsel %vm535_vm2, %v537_v43, %v533_v44 }
 0x7ea   :  { %v541_v46 = vsel %vm186_vm3, %v538_v34, %v1530_v45 }
 0x7eb   :  { %544 = vrot.lane.b32.xlu2 %v541_v46, %s1665_s27  ;;  %v542_v57 = vmul.f32 %v541_v46, %v1813_v47 }
 0x7ee   :  { %1359 = vmatmul.msk.bf16.gmra.mxu0 %vm87_vm0, %v79_v3 }
 0x845   :  { %v545_v48 = vpop.permute.xlu2 %544 }
 0x846   :  { %v547_v49 = vmul.f32 %v545_v48, %v541_v46 }
 0x848   :  { %549 = vrot.lane.b32.xlu1 %v547_v49, %s1665_s27 }
 0x84d   :  { %v617_v50 = vpop.permute.xlu0 %616 }
 0x84e   :  { %v619_v53 = vmul.f32 %v617_v50, %v613_v28 }
 0x850   :  { %621 = vrot.lane.b32.xlu2 %v619_v53, %s1665_s27 }
 0x85b   :  { %v119_v11 = vpop.f32.mrf.mxu0 }
 0x85c   :  { %v120_v16 = vadd.f32 %v1719_v7, %v119_v11 }
 0x863   :  { %v1878_v12 = vpop.f32.mrf.mxu0 }
 0x86b   :  { %v1880_v13 = vpop.f32.mrf.mxu0 }
 0x873   :  { %v1882_v14 = vpop.f32.mrf.mxu0 }
 0x8aa   :  { %v622_v32 = vpop.permute.xlu2 %621 }
 0x8ab   :  { %v1844_v55 = vadd.f32 %v622_v32, %v614_v54 }
 0x8ad   :  { %1531 = vtanh.f32 %v1844_v55 }
 0x8b3   :  { %v1532_v56 = vpop.eup %1531 }
 0x8b4   :  { %627 = vrot.lane.b32.xlu1 %v1532_v56, %s1665_s27 }
 0x8ba   :  { %v550_v58 = vpop.permute.xlu1 %549 }
 0x8bb   :  { %v1849_v59 = vadd.f32 %v550_v58, %v542_v57 }
 0x8bd   :  { %1533 = vtanh.f32 %v1849_v59 }
 0x8c3   :  { %v1534_v41 = vpop.eup %1533 }
 0x8c4   :  { %555 = vrot.lane.b32.xlu0 %v1534_v41, %s1665_s27 }
 0x926   :  { %v628_v47 = vpop.permute.xlu1 %627 }
 0x927   :  { %v630_v62 = vmul.f32 %v628_v47, %v613_v28 }
 0x929   :  { %v631_v2 = vpack.c.bf16 %v630_v62, %v630_v62 }
 0x92b   :  { %633 = vrot.lane.b32.xlu0 %v631_v2, %s1662_s20 }
 0x936   :  { %v556_v4 = vpop.permute.xlu0 %555 }
 0x937   :  { %v558_v6 = vmul.f32 %v556_v4, %v541_v46 }
 0x939   :  { %v572_v8 = vpack.c.bf16 %v558_v6, %v558_v6 }
 0x93b   :  { %574 = vrot.lane.b32.xlu2 %v572_v8, %s1662_s20 }
 0x995   :  { %v575_v9 = vpop.permute.xlu2 %574 }
 0x996   :  { %1398 = vmatmul.msk.bf16.vlgmr.msrb.gmra.mxu2 %vm141_vm6, %v575_v9 }
 0x997   :  { %958 = vmatpush.bf16.msrb.mxu2 %v1697_v1 }
 0x99b   :  { %959 = vmatpush.bf16.msrb.mxu2 %v1706_v5 }
 0x99d   :  { %v634_v10 = vpop.permute.xlu0 %633 }
 0x99e   :  { %1400 = vmatmul.msk.bf16.vlgmr.msrb.gmra.mxu3 %vm141_vm6, %v634_v10  ;;  %1402 = vmatmul.msk.bf16.vlgmr.msrb.gmra.mxu0 %vm141_vm6, %v634_v10 }
 0x99f   :  { %978 = vmatpush.bf16.msrb.mxu3 %v1733_v36  ;;  %1037 = vmatpush.bf16.msrb.mxu0 %v1735_v37 }
 0x9a3   :  { %979 = vmatpush.bf16.msrb.mxu3 %v1738_v38  ;;  %1038 = vmatpush.bf16.msrb.mxu0 %v1741_v39 }
 0xa19   :  { %v588_v15 = vpop.f32.mrf.mxu2 }
 0xa1b   :  { %v699_v17 = vpop.f32.mrf.mxu0 }
 0xa1c   :  { %v723_v18 = vadd.f32 %v699_v17, %v120_v16 }
 0xa1e   :  { %v1404_v19 = vmul.f32 -1.442695, %v723_v18 }
 0xa20   :  { %1535 = vpow2.f32 %v1404_v19 }
 0xa21   :  { %v590_v21 = vpop.f32.mrf.mxu2  ;;  %v647_v22 = vpop.f32.mrf.mxu3 }
 0xa22   :  { %v648_v23 = vadd.f32 %v647_v22, %v588_v15 }
 0xa23   :  { %v701_v24 = vpop.f32.mrf.mxu0 }
 0xa24   :  { %v651_v25 = vadd.f32 %v1764_v51, %v648_v23 }
 0xa26   :  { %v1536_v26 = vpop.eup %1535  ;;  %v1401_v27 = vmul.f32 -1.442695, %v651_v25 }
 0xa27   :  { %v727_v28 = vadd.f32 1.0, %v1536_v26 }
 0xa28   :  { %1537 = vpow2.f32 %v1401_v27 }
 0xa29   :  { %1539 = vrcp.f32 %v727_v28  ;;  %v649_v29 = vpop.f32.mrf.mxu3  ;;  %v739_v42 = vand.u32 2147483648, %v727_v28  ;;  %v737_v44 = vand.u32 2147483647, %v727_v28  ;;  %vm733_vm5 = vweird.f32 %v727_v28 }
 0xa2b   :  { %v740_v46 = vor.u32 1.1754944e-38, %v739_v42  ;;  %vm738_vm8 = vcmp.eq.f32.partialorder %v737_v44, 8.507059e+37 }
 0xa2e   :  { %v1538_v30 = vpop.eup %1537 }
 0xa2f   :  { %v1540_v31 = vpop.eup %1539  ;;  %v655_v33 = vadd.f32 1.0, %v1538_v30 }
 0xa30   :  { %v729_v35 = vmul.f32 %v1540_v31, %v727_v28  ;;  %vm734_vm4 = vweird.f32 %v1540_v31 }
 0xa31   :  { %1541 = vrcp.f32 %v655_v33  ;;  %vm735_vm7 = vmor %vm733_vm5, %vm734_vm4  ;;  %v667_v56 = vand.u32 2147483648, %v655_v33  ;;  %v665_v58 = vand.u32 2147483647, %v655_v33  ;;  %vm661_vm10 = vweird.f32 %v655_v33 }
 0xa32   :  { %v730_v40 = vsub.f32 1.0, %v729_v35  ;;  %1543 = vtanh.f32 %v723_v18 }
 0xa33   :  { %1545 = vtanh.f32 %v651_v25  ;;  %v668_v52 = vor.u32 1.1754944e-38, %v667_v56  ;;  %vm666_vm12 = vcmp.eq.f32.partialorder %v665_v58, 8.507059e+37 }
 0xa34   :  { %v731_v43 = vmul.f32 %v1540_v31, %v730_v40 }
 0xa36   :  { %v732_v45 = vadd.f32 %v1540_v31, %v731_v43 }
 0xa37   :  { %v1542_v34 = vpop.eup %1541 }
 0xa38   :  { %v736_v48 = vsel %vm735_vm7, %v1540_v31, %v732_v45  ;;  %v657_v49 = vmul.f32 %v1542_v34, %v655_v33  ;;  %v1544_v50 = vpop.eup %1543  ;;  %vm662_vm9 = vweird.f32 %v1542_v34 }
 0xa39   :  { %v741_v53 = vsel %vm738_vm8, %v740_v46, %v736_v48  ;;  %vm663_vm11 = vmor %vm661_vm10, %vm662_vm9  ;;  %v1546_v61 = vpop.eup %1545 }
 0xa3a   :  { %v744_v54 = vsel %vm186_vm3, %v741_v53, %v1544_v50  ;;  %v658_v32 = vsub.f32 1.0, %v657_v49 }
 0xa3b   :  { %747 = vrot.lane.b32.xlu1 %v744_v54, %s1665_s27  ;;  %v745_v10 = vmul.f32 %v744_v54, %v1844_v55 }
 0xa3c   :  { %v659_v57 = vmul.f32 %v1542_v34, %v658_v32 }
 0xa3e   :  { %v660_v41 = vadd.f32 %v1542_v34, %v659_v57 }
 0xa40   :  { %v664_v60 = vsel %vm663_vm11, %v1542_v34, %v660_v41 }
 0xa41   :  { %v669_v47 = vsel %vm666_vm12, %v668_v52, %v664_v60 }
 0xa42   :  { %v672_v62 = vsel %vm186_vm3, %v669_v47, %v1546_v61 }
 0xa43   :  { %675 = vrot.lane.b32.xlu2 %v672_v62, %s1665_s27  ;;  %v673_v4 = vmul.f32 %v672_v62, %v1849_v59 }
 0xa9d   :  { %v676_v63 = vpop.permute.xlu2 %675 }
 0xa9e   :  { %v678_v0 = vmul.f32 %v676_v63, %v672_v62 }
 0xaa0   :  { %680 = vrot.lane.b32.xlu1 %v678_v0, %s1665_s27 }
 0xaad   :  { %v748_v2 = vpop.permute.xlu1 %747 }
 0xaae   :  { %v750_v3 = vmul.f32 %v748_v2, %v744_v54 }
 0xab0   :  { %752 = vrot.lane.b32.xlu0 %v750_v3, %s1665_s27 }
 0xb12   :  { %v681_v6 = vpop.permute.xlu1 %680 }
 0xb13   :  { %v1895_v8 = vadd.f32 %v681_v6, %v673_v4 }
 0xb15   :  { %1547 = vtanh.f32 %v1895_v8 }
 0xb1b   :  { %v1548_v9 = vpop.eup %1547 }
 0xb1c   :  { %686 = vrot.lane.b32.xlu0 %v1548_v9, %s1665_s27 }
 0xb22   :  { %v753_v11 = vpop.permute.xlu0 %752 }
 0xb23   :  { %v1900_v15 = vadd.f32 %v753_v11, %v745_v10 }
 0xb25   :  { %1549 = vtanh.f32 %v1900_v15 }
 0xb2b   :  { %v1550_v16 = vpop.eup %1549 }
 0xb2c   :  { %758 = vrot.lane.b32.xlu2 %v1550_v16, %s1665_s27 }
 0xb86   :  { %v759_v17 = vpop.permute.xlu2 %758 }
 0xb87   :  { %v761_v59 = vmul.f32 %v759_v17, %v744_v54 }
 0xb89   :  { %v762_v18 = vpack.c.bf16 %v761_v59, %v761_v59 }
 0xb8b   :  { %764 = vrot.lane.b32.xlu1 %v762_v18, %s1662_s20 }
 0xb8e   :  { %v687_v19 = vpop.permute.xlu0 %686 }
 0xb8f   :  { %v689_v21 = vmul.f32 %v687_v19, %v672_v62 }
 0xb91   :  { %v703_v22 = vpack.c.bf16 %v689_v21, %v689_v21 }
 0xb93   :  { %705 = vrot.lane.b32.xlu2 %v703_v22, %s1662_s20 }
 0xbed   :  { %v706_v23 = vpop.permute.xlu2 %705 }
 0xbee   :  { %1403 = vmatmul.msk.bf16.vlgmr.msra.gmra.mxu1 %vm141_vm6, %v706_v23 }
 0xbef   :  { %1089 = vmatpush.bf16.msra.mxu1 %v1697_v1  ;;  %v122_v1 = vadd.f32 %v1719_v7, %v1878_v12 }
 0xbf3   :  { %1090 = vmatpush.bf16.msra.mxu1 %v1706_v5 }
 0xbfd   :  { %v765_v55 = vpop.permute.xlu1 %764 }
 0xbfe   :  { %1405 = vmatmul.msk.bf16.vlgmr.msra.gmra.mxu2 %vm141_vm6, %v765_v55  ;;  %1407 = vmatmul.msk.bf16.vlgmr.msra.gmra.mxu3 %vm141_vm6, %v765_v55 }
 0xbff   :  { %1168 = vmatpush.bf16.msra.mxu3 %v1735_v37  ;;  %1109 = vmatpush.bf16.msra.mxu2 %v1733_v36 }
 0xc03   :  { %1169 = vmatpush.bf16.msra.mxu3 %v1741_v39  ;;  %1110 = vmatpush.bf16.msra.mxu2 %v1738_v38 }
 0xc6b   :  { %v719_v24 = vpop.f32.mrf.mxu1 }
 0xc73   :  { %v721_v25 = vpop.f32.mrf.mxu1 }
 0xc81   :  { %v778_v26 = vpop.f32.mrf.mxu2  ;;  %v830_v5 = vpop.f32.mrf.mxu3 }
 0xc82   :  { %v779_v27 = vadd.f32 %v778_v26, %v719_v24  ;;  %v854_v28 = vadd.f32 %v830_v5, %v122_v1  ;;  %v1945_v5 = vld [vmem:[%s2025_s3] ss:$0 sm:$0xff] }
 0xc84   :  { %v782_v29 = vadd.f32 %v1764_v51, %v779_v27  ;;  %v1409_v30 = vmul.f32 -1.442695, %v854_v28  ;;  %v125_v27 = vadd.f32 %v1945_v5, %v1880_v13 }
 0xc86   :  { %v1406_v31 = vmul.f32 -1.442695, %v782_v29  ;;  %1551 = vpow2.f32 %v1409_v30 }
 0xc88   :  { %1553 = vpow2.f32 %v1406_v31 }
 0xc89   :  { %v780_v36 = vpop.f32.mrf.mxu2  ;;  %v832_v37 = vpop.f32.mrf.mxu3 }
 0xc8c   :  { %v1552_v39 = vpop.eup %1551 }
 0xc8d   :  { %v858_v38 = vadd.f32 1.0, %v1552_v39 }
 0xc8e   :  { %v1554_v33 = vpop.eup %1553 }
 0xc8f   :  { %v786_v35 = vadd.f32 1.0, %v1554_v33  ;;  %1555 = vrcp.f32 %v858_v38  ;;  %v870_v44 = vand.u32 2147483648, %v858_v38  ;;  %v868_v46 = vand.u32 2147483647, %v858_v38 }
 0xc90   :  { %vm864_vm15 = vweird.f32 %v858_v38 }
 0xc91   :  { %1557 = vrcp.f32 %v786_v35  ;;  %v798_v48 = vand.u32 2147483648, %v786_v35  ;;  %v796_v50 = vand.u32 2147483647, %v786_v35  ;;  %v871_v54 = vor.u32 1.1754944e-38, %v870_v44 }
 0xc92   :  { %1559 = vtanh.f32 %v854_v28  ;;  %vm792_vm2 = vweird.f32 %v786_v35  ;;  %vm869_vm4 = vcmp.eq.f32.partialorder %v868_v46, 8.507059e+37 }
 0xc93   :  { %1561 = vtanh.f32 %v782_v29  ;;  %v799_v58 = vor.u32 1.1754944e-38, %v798_v48  ;;  %vm797_vm7 = vcmp.eq.f32.partialorder %v796_v50, 8.507059e+37 }
 0xc95   :  { %v1556_v40 = vpop.eup %1555 }
 0xc96   :  { %v860_v12 = vmul.f32 %v1556_v40, %v858_v38  ;;  %vm865_vm13 = vweird.f32 %v1556_v40 }
 0xc97   :  { %v1558_v7 = vpop.eup %1557  ;;  %vm866_vm1 = vmor %vm864_vm15, %vm865_vm13 }
 0xc98   :  { %v788_v42 = vmul.f32 %v1558_v7, %v786_v35  ;;  %v861_v43 = vsub.f32 1.0, %v860_v12  ;;  %vm793_vm14 = vweird.f32 %v1558_v7  ;;  %v1560_v56 = vpop.eup %1559 }
 0xc99   :  { %vm794_vm5 = vmor %vm792_vm2, %vm793_vm14  ;;  %v1562_v41 = vpop.eup %1561 }
 0xc9a   :  { %v789_v45 = vsub.f32 1.0, %v788_v42  ;;  %v862_v34 = vmul.f32 %v1556_v40, %v861_v43 }
 0xc9c   :  { %v790_v49 = vmul.f32 %v1558_v7, %v789_v45  ;;  %v863_v53 = vadd.f32 %v1556_v40, %v862_v34 }
 0xc9e   :  { %v791_v32 = vadd.f32 %v1558_v7, %v790_v49  ;;  %v867_v57 = vsel %vm866_vm1, %v1556_v40, %v863_v53 }
 0xc9f   :  { %v872_v52 = vsel %vm869_vm4, %v871_v54, %v867_v57 }
 0xca0   :  { %v795_v60 = vsel %vm794_vm5, %v1558_v7, %v791_v32  ;;  %v875_v61 = vsel %vm186_vm3, %v872_v52, %v1560_v56 }
 0xca1   :  { %v800_v47 = vsel %vm797_vm7, %v799_v58, %v795_v60  ;;  %878 = vrot.lane.b32.xlu1 %v875_v61, %s1665_s27  ;;  %v876_v11 = vmul.f32 %v875_v61, %v1900_v15 }
 0xca2   :  { %v803_v62 = vsel %vm186_vm3, %v800_v47, %v1562_v41 }
 0xca3   :  { %806 = vrot.lane.b32.xlu0 %v803_v62, %s1665_s27  ;;  %v804_v4 = vmul.f32 %v803_v62, %v1895_v8 }
 0xd13   :  { %v879_v63 = vpop.permute.xlu1 %878 }
 0xd14   :  { %v881_v0 = vmul.f32 %v879_v63, %v875_v61 }
 0xd15   :  { %v807_v2 = vpop.permute.xlu0 %806 }
 0xd16   :  { %v809_v3 = vmul.f32 %v807_v2, %v803_v62  ;;  %883 = vrot.lane.b32.xlu0 %v881_v0, %s1665_s27 }
 0xd18   :  { %811 = vrot.lane.b32.xlu2 %v809_v3, %s1665_s27 }
 0xd72   :  { %v812_v6 = vpop.permute.xlu2 %811 }
 0xd73   :  { %v1927_v9 = vadd.f32 %v812_v6, %v804_v4 }
 0xd75   :  { %1563 = vtanh.f32 %v1927_v9 }
 0xd7b   :  { %v1564_v10 = vpop.eup %1563 }
 0xd7c   :  { %817 = vrot.lane.b32.xlu1 %v1564_v10, %s1665_s27 }
 0xd88   :  { %v884_v16 = vpop.permute.xlu0 %883 }
 0xd89   :  { %v1932_v17 = vadd.f32 %v884_v16, %v876_v11 }
 0xd8b   :  { %1565 = vtanh.f32 %v1932_v17 }
 0xd91   :  { %v1566_v59 = vpop.eup %1565 }
 0xd92   :  { %889 = vrot.lane.b32.xlu2 %v1566_v59, %s1665_s27 }
 0xdec   :  { %v890_v18 = vpop.permute.xlu2 %889 }
 0xded   :  { %v892_v8 = vmul.f32 %v890_v18, %v875_v61 }
 0xdee   :  { %v818_v19 = vpop.permute.xlu1 %817 }
 0xdef   :  { %v820_v21 = vmul.f32 %v818_v19, %v803_v62  ;;  %v893_v22 = vpack.c.bf16 %v892_v8, %v892_v8 }
 0xdf1   :  { %v834_v23 = vpack.c.bf16 %v820_v21, %v820_v21  ;;  %895 = vrot.lane.b32.xlu1 %v893_v22, %s1662_s20 }
 0xdf3   :  { %836 = vrot.lane.b32.xlu0 %v834_v23, %s1662_s20 }
 0xe63   :  { %v896_v55 = vpop.permute.xlu1 %895 }
 0xe64   :  { %1410 = vmatmul.msk.bf16.vlgmr.msrb.gmra.mxu1 %vm141_vm6, %v896_v55  ;;  %1412 = vmatmul.msk.bf16.vlgmr.msrb.gmra.mxu2 %vm141_vm6, %v896_v55 }
 0xe65   :  { %v837_v15 = vpop.permute.xlu0 %836 }
 0xe66   :  { %1408 = vmatmul.msk.bf16.vlgmr.msra.gmra.mxu0 %vm141_vm6, %v837_v15 }
 0xee1   :  { %v909_v24 = vpop.f32.mrf.mxu1 }
 0xee3   :  { %v850_v25 = vpop.f32.mrf.mxu0 }
 0xee4   :  { %v910_v1 = vadd.f32 %v909_v24, %v850_v25  ;;  %v127_v25 = vadd.f32 %v1945_v5, %v1882_v14 }
 0xee6   :  { %v913_v26 = vadd.f32 %v1764_v51, %v910_v1 }
 0xee7   :  { %v961_v29 = vpop.f32.mrf.mxu2 }
 0xee8   :  { %v1411_v28 = vmul.f32 -1.442695, %v913_v26  ;;  %v985_v30 = vadd.f32 %v961_v29, %v125_v27  ;;  %v1977_v29 = vld [vmem:[%s2025_s3 + $0x1] ss:$0 sm:$0xff] }
 0xee9   :  { %v911_v31 = vpop.f32.mrf.mxu1 }
 0xeea   :  { %1567 = vpow2.f32 %v1411_v28  ;;  %v1414_v36 = vmul.f32 -1.442695, %v985_v30 }
 0xeeb   :  { %v852_v37 = vpop.f32.mrf.mxu0 }
 0xeec   :  { %1569 = vpow2.f32 %v1414_v36 }
 0xeef   :  { %v963_v33 = vpop.f32.mrf.mxu2 }
 0xef0   :  { %v1568_v39 = vpop.eup %1567 }
 0xef1   :  { %v917_v38 = vadd.f32 1.0, %v1568_v39 }
 0xef2   :  { %v1570_v51 = vpop.eup %1569 }
 0xef3   :  { %1571 = vrcp.f32 %v917_v38  ;;  %v989_v35 = vadd.f32 1.0, %v1570_v51  ;;  %v929_v13 = vand.u32 2147483648, %v917_v38  ;;  %v927_v45 = vand.u32 2147483647, %v917_v38 }
 0xef4   :  { %vm923_vm9 = vweird.f32 %v917_v38 }
 0xef5   :  { %1573 = vrcp.f32 %v989_v35  ;;  %v1001_v48 = vand.u32 2147483648, %v989_v35  ;;  %v930_v49 = vor.u32 1.1754944e-38, %v929_v13  ;;  %v999_v53 = vand.u32 2147483647, %v989_v35 }
 0xef6   :  { %1575 = vtanh.f32 %v913_v26  ;;  %vm928_vm12 = vcmp.eq.f32.partialorder %v927_v45, 8.507059e+37  ;;  %vm995_vm13 = vweird.f32 %v989_v35 }
 0xef7   :  { %1577 = vtanh.f32 %v985_v30  ;;  %v1002_v41 = vor.u32 1.1754944e-38, %v1001_v48  ;;  %vm1000_vm15 = vcmp.eq.f32.partialorder %v999_v53, 8.507059e+37 }
 0xef9   :  { %v1572_v40 = vpop.eup %1571 }
 0xefa   :  { %v919_v7 = vmul.f32 %v1572_v40, %v917_v38  ;;  %vm924_vm8 = vweird.f32 %v1572_v40 }
 0xefb   :  { %v1574_v12 = vpop.eup %1573  ;;  %vm925_vm10 = vmor %vm923_vm9, %vm924_vm8 }
 0xefc   :  { %v920_v42 = vsub.f32 1.0, %v919_v7  ;;  %v991_v43 = vmul.f32 %v1574_v12, %v989_v35  ;;  %vm996_vm11 = vweird.f32 %v1574_v12  ;;  %v1576_v32 = vpop.eup %1575 }
 0xefd   :  { %vm997_vm14 = vmor %vm995_vm13, %vm996_vm11  ;;  %v1578_v60 = vpop.eup %1577 }
 0xefe   :  { %v921_v44 = vmul.f32 %v1572_v40, %v920_v42  ;;  %v992_v34 = vsub.f32 1.0, %v991_v43 }
 0xf00   :  { %v922_v46 = vadd.f32 %v1572_v40, %v921_v44  ;;  %v993_v50 = vmul.f32 %v1574_v12, %v992_v34 }
 0xf02   :  { %v926_v54 = vsel %vm925_vm10, %v1572_v40, %v922_v46  ;;  %v994_v57 = vadd.f32 %v1574_v12, %v993_v50 }
 0xf03   :  { %v931_v56 = vsel %vm928_vm12, %v930_v49, %v926_v54 }
 0xf04   :  { %v934_v58 = vsel %vm186_vm3, %v931_v56, %v1576_v32  ;;  %v998_v52 = vsel %vm997_vm14, %v1574_v12, %v994_v57 }
 0xf05   :  { %937 = vrot.lane.b32.xlu2 %v934_v58, %s1665_s27  ;;  %v1003_v61 = vsel %vm1000_vm15, %v1002_v41, %v998_v52  ;;  %v935_v3 = vmul.f32 %v934_v58, %v1927_v9 }
 0xf06   :  { %v1006_v47 = vsel %vm186_vm3, %v1003_v61, %v1578_v60 }
 0xf07   :  { %1009 = vrot.lane.b32.xlu0 %v1006_v47, %s1665_s27  ;;  %v1007_v10 = vmul.f32 %v1006_v47, %v1932_v17 }
 0xf5f   :  { %v938_v62 = vpop.permute.xlu2 %937 }
 0xf60   :  { %v940_v63 = vmul.f32 %v938_v62, %v934_v58 }
 0xf62   :  { %942 = vrot.lane.b32.xlu1 %v940_v63, %s1665_s27 }
 0xf79   :  { %v1010_v0 = vpop.permute.xlu0 %1009 }
 0xf7a   :  { %v1012_v2 = vmul.f32 %v1010_v0, %v1006_v47 }
 0xf7c   :  { %1014 = vrot.lane.b32.xlu2 %v1012_v2, %s1665_s27 }
 0xfd4   :  { %v943_v4 = vpop.permute.xlu1 %942 }
 0xfd5   :  { %v1958_v6 = vadd.f32 %v943_v4, %v935_v3 }
 0xfd6   :  { %v1015_v11 = vpop.permute.xlu2 %1014 }
 0xfd7   :  { %1579 = vtanh.f32 %v1958_v6  ;;  %v1962_v16 = vadd.f32 %v1015_v11, %v1007_v10 }
 0xfd9   :  { %1581 = vtanh.f32 %v1962_v16 }
 0xfdd   :  { %v1580_v59 = vpop.eup %1579 }
 0xfde   :  { %948 = vrot.lane.b32.xlu0 %v1580_v59, %s1665_s27 }
 0xfdf   :  { %v1582_v18 = vpop.eup %1581 }
 0xfe0   :  { %1020 = vrot.lane.b32.xlu1 %v1582_v18, %s1665_s27 }
0x1050   :  { %v949_v8 = vpop.permute.xlu0 %948 }
0x1051   :  { %v951_v9 = vmul.f32 %v949_v8, %v934_v58 }
0x1052   :  { %v1021_v21 = vpop.permute.xlu1 %1020 }
0x1053   :  { %v965_v19 = vpack.c.bf16 %v951_v9, %v951_v9  ;;  %v1023_v22 = vmul.f32 %v1021_v21, %v1006_v47 }
0x1055   :  { %967 = vrot.lane.b32.xlu2 %v965_v19, %s1662_s20  ;;  %v1024_v17 = vpack.c.bf16 %v1023_v22, %v1023_v22 }
0x1057   :  { %1026 = vrot.lane.b32.xlu0 %v1024_v17, %s1662_s20 }
0x10af   :  { %v968_v23 = vpop.permute.xlu2 %967 }
0x10b0   :  { %1413 = vmatmul.msk.bf16.vlgmr.msrb.gmra.mxu3 %vm141_vm6, %v968_v23 }
0x10c9   :  { %v1027_v55 = vpop.permute.xlu0 %1026 }
0x10ca   :  { %1415 = vmatmul.msk.bf16.vlgmr.msrb.gmra.mxu0 %vm141_vm6, %v1027_v55  ;;  %1417 = vmatmul.msk.bf16.vlgmr.msra.gmra.mxu1 %vm141_vm6, %v1027_v55 }
0x1133   :  { %v981_v15 = vpop.f32.mrf.mxu3 }
0x113b   :  { %v983_v24 = vpop.f32.mrf.mxu3 }
0x1147   :  { %v1040_v1 = vpop.f32.mrf.mxu0  ;;  %v1092_v26 = vpop.f32.mrf.mxu1 }
0x1148   :  { %v1041_v27 = vadd.f32 %v1040_v1, %v981_v15  ;;  %v1116_v28 = vadd.f32 %v1092_v26, %v127_v25 }
0x114a   :  { %v1044_v30 = vadd.f32 %v1977_v29, %v1041_v27  ;;  %v1419_v31 = vmul.f32 -1.442695, %v1116_v28 }
0x114c   :  { %v1416_v36 = vmul.f32 -1.442695, %v1044_v30  ;;  %1583 = vpow2.f32 %v1419_v31 }
0x114e   :  { %1585 = vpow2.f32 %v1416_v36 }
0x114f   :  { %v1042_v37 = vpop.f32.mrf.mxu0  ;;  %v1094_v39 = vpop.f32.mrf.mxu1 }
0x1152   :  { %v1584_v33 = vpop.eup %1583 }
0x1153   :  { %v1120_v14 = vadd.f32 1.0, %v1584_v33 }
0x1154   :  { %v1586_v38 = vpop.eup %1585 }
0x1155   :  { %v1048_v5 = vadd.f32 1.0, %v1586_v38  ;;  %1587 = vrcp.f32 %v1120_v14  ;;  %v1132_v42 = vand.u32 2147483648, %v1120_v14  ;;  %v1130_v44 = vand.u32 2147483647, %v1120_v14 }
0x1156   :  { %vm1126_vm4 = vweird.f32 %v1120_v14 }
0x1157   :  { %1589 = vrcp.f32 %v1048_v5  ;;  %v1060_v45 = vand.u32 2147483648, %v1048_v5  ;;  %v1058_v46 = vand.u32 2147483647, %v1048_v5  ;;  %v1133_v49 = vor.u32 1.1754944e-38, %v1132_v42 }
0x1158   :  { %1591 = vtanh.f32 %v1116_v28  ;;  %vm1054_vm7 = vweird.f32 %v1048_v5  ;;  %vm1131_vm8 = vcmp.eq.f32.partialorder %v1130_v44, 8.507059e+37  ;;  %v1463_v44 = vld [vmem:[#allocation2 + $0x48] sm:$0xff] }
0x1159   :  { %1593 = vtanh.f32 %v1044_v30  ;;  %v1061_v32 = vor.u32 1.1754944e-38, %v1060_v45  ;;  %vm1059_vm10 = vcmp.eq.f32.partialorder %v1058_v46, 8.507059e+37  ;;  %v1462_v45 = vld [vmem:[#allocation2 + $0x40] sm:$0xff]  ;;  %1233 = vmatpush.bf16.msra.mxu0 %v1463_v44  ;;  %v1461_v46 = vld [vmem:[#allocation2 + $0x38] sm:$0xff] }
0x115a   :  { %1263 = vmatpush.bf16.msrb.mxu1 %v1462_v45 }
0x115b   :  { %v1588_v51 = vpop.eup %1587 }
0x115c   :  { %v1122_v40 = vmul.f32 %v1588_v51, %v1120_v14  ;;  %vm1127_vm1 = vweird.f32 %v1588_v51 }
0x115d   :  { %v1590_v35 = vpop.eup %1589  ;;  %vm1128_vm5 = vmor %vm1126_vm4, %vm1127_vm1 }
0x115e   :  { %v1050_v7 = vmul.f32 %v1590_v35, %v1048_v5  ;;  %v1123_v12 = vsub.f32 1.0, %v1122_v40  ;;  %vm1055_vm2 = vweird.f32 %v1590_v35  ;;  %v1592_v53 = vpop.eup %1591  ;;  %1264 = vmatpush.bf16.msrb.mxu1 %v1461_v46 }
0x115f   :  { %vm1056_vm9 = vmor %vm1054_vm7, %vm1055_vm2  ;;  %v1594_v56 = vpop.eup %1593 }
0x1160   :  { %v1051_v13 = vsub.f32 1.0, %v1050_v7  ;;  %v1124_v43 = vmul.f32 %v1588_v51, %v1123_v12 }
0x1162   :  { %v1052_v34 = vmul.f32 %v1590_v35, %v1051_v13  ;;  %v1125_v48 = vadd.f32 %v1588_v51, %v1124_v43 }
0x1164   :  { %v1053_v50 = vadd.f32 %v1590_v35, %v1052_v34  ;;  %v1129_v54 = vsel %vm1128_vm5, %v1588_v51, %v1125_v48  ;;  %v1215_v34 = vpack.c.bf16 %v1214_v20, %v1214_v20 }
0x1165   :  { %v1134_v57 = vsel %vm1131_vm8, %v1133_v49, %v1129_v54 }
0x1166   :  { %v1057_v58 = vsel %vm1056_vm9, %v1590_v35, %v1053_v50  ;;  %v1137_v41 = vsel %vm186_vm3, %v1134_v57, %v1592_v53  ;;  %1426 = vmatmul.msk.bf16.vlgmr.msra.gmra.mxu0 %vm87_vm0, %v1215_v34  ;;  %v1465_v53 = vld [vmem:[#allocation2 + $0x58] sm:$0xff]  ;;  %v1464_v57 = vld [vmem:[#allocation2 + $0x50] sm:$0xff] }
0x1167   :  { %v1062_v52 = vsel %vm1059_vm10, %v1061_v32, %v1057_v58  ;;  %1140 = vrot.lane.b32.xlu2 %v1137_v41, %s1665_s27  ;;  %v1138_v0 = vmul.f32 %v1137_v41, %v1962_v16  ;;  %1296 = vmatpush.bf16.msrb.mxu2 %v1465_v53  ;;  %v1467_v58 = vld [vmem:[#allocation2 + $0x68] sm:$0xff] }
0x1168   :  { %v1065_v60 = vsel %vm186_vm3, %v1062_v52, %v1594_v56  ;;  %1327 = vmatpush.bf16.msrb.mxu3 %v1467_v58  ;;  %v1476_v52 = vld [vmem:[%s2025_s3 + $0x2] ss:$0 sm:$0xff] }
0x1169   :  { %1068 = vrot.lane.b32.xlu1 %v1065_v60, %s1665_s27  ;;  %v1066_v10 = vmul.f32 %v1065_v60, %v1958_v6 }
0x116b   :  { %1297 = vmatpush.bf16.msrb.mxu2 %v1464_v57 }
0x11c1   :  { %v1141_v61 = vpop.permute.xlu2 %1140 }
0x11c2   :  { %v1143_v47 = vmul.f32 %v1141_v61, %v1137_v41 }
0x11c4   :  { %1145 = vrot.lane.b32.xlu1 %v1143_v47, %s1665_s27 }
0x11db   :  { %v1069_v62 = vpop.permute.xlu1 %1068 }
0x11dc   :  { %v1071_v63 = vmul.f32 %v1069_v62, %v1065_v60 }
0x11de   :  { %1073 = vrot.lane.b32.xlu0 %v1071_v63, %s1665_s27 }
0x11e3   :  { %v1235_v54 = vpop.f32.mrf.mxu0 }
0x11eb   :  { %v1237_v32 = vpop.f32.mrf.mxu0 }
0x1236   :  { %v1146_v2 = vpop.permute.xlu1 %1145 }
0x1237   :  { %v1148_v3 = vadd.f32 %v1146_v2, %v1138_v0  ;;  %v1477_v2 = vld [vmem:[%s2025_s3 + $0x3] ss:$0 sm:$0xff] }
0x1239   :  { %1595 = vtanh.f32 %v1148_v3 }
0x123f   :  { %v1596_v4 = vpop.eup %1595 }
0x1240   :  { %1151 = vrot.lane.b32.xlu0 %v1596_v4, %s1665_s27 }
0x1250   :  { %v1074_v11 = vpop.permute.xlu0 %1073 }
0x1251   :  { %v1076_v59 = vadd.f32 %v1074_v11, %v1066_v10 }
0x1253   :  { %1597 = vtanh.f32 %v1076_v59 }
0x1259   :  { %v1598_v18 = vpop.eup %1597 }
0x125a   :  { %1079 = vrot.lane.b32.xlu2 %v1598_v18, %s1665_s27  ;;  %v1478_v18 = vld [vmem:[%s2025_s3 + $0x4] ss:$0 sm:$0xff] }
0x12b2   :  { %v1152_v8 = vpop.permute.xlu0 %1151 }
0x12b3   :  { %v1154_v9 = vmul.f32 %v1152_v8, %v1137_v41  ;;  %v1466_v41 = vld [vmem:[#allocation2 + $0x60] sm:$0xff] }
0x12b4   :  { %v1080_v19 = vpop.permute.xlu2 %1079  ;;  %1328 = vmatpush.bf16.msrb.mxu3 %v1466_v41 }
0x12b5   :  { %v1082_v21 = vmul.f32 %v1080_v19, %v1065_v60  ;;  %v1155_v22 = vpack.c.bf16 %v1154_v9, %v1154_v9 }
0x12b7   :  { %v1096_v16 = vpack.c.bf16 %v1082_v21, %v1082_v21  ;;  %1157 = vrot.lane.b32.xlu2 %v1155_v22, %s1662_s20 }
0x12b9   :  { %1098 = vrot.lane.b32.xlu1 %v1096_v16, %s1662_s20 }
0x1311   :  { %v1158_v17 = vpop.permute.xlu2 %1157 }
0x1312   :  { %1420 = vmatmul.msk.bf16.vlgmr.msra.gmra.mxu3 %vm141_vm6, %v1158_v17 }
0x132b   :  { %v1099_v6 = vpop.permute.xlu1 %1098 }
0x132c   :  { %1418 = vmatmul.msk.bf16.vlgmr.msra.gmra.mxu2 %vm141_vm6, %v1099_v6 }
0x1395   :  { %v1171_v23 = vpop.f32.mrf.mxu3 }
0x139d   :  { %v1173_v55 = vpop.f32.mrf.mxu3 }
0x13af   :  { %v1112_v15 = vpop.f32.mrf.mxu2 }
0x13b0   :  { %v1172_v24 = vadd.f32 %v1171_v23, %v1112_v15 }
0x13b2   :  { %v1175_v25 = vadd.f32 %v1977_v29, %v1172_v24 }
0x13b4   :  { %v1421_v1 = vmul.f32 -1.442695, %v1175_v25 }
0x13b6   :  { %1599 = vpow2.f32 %v1421_v1 }
0x13b7   :  { %v1114_v26 = vpop.f32.mrf.mxu2 }
0x13bc   :  { %v1600_v27 = vpop.eup %1599 }
0x13bd   :  { %v1179_v28 = vadd.f32 1.0, %v1600_v27 }
0x13bf   :  { %1601 = vrcp.f32 %v1179_v28  ;;  %v1191_v37 = vand.u32 2147483648, %v1179_v28  ;;  %v1189_v33 = vand.u32 2147483647, %v1179_v28  ;;  %vm1185_vm12 = vweird.f32 %v1179_v28 }
0x13c0   :  { %1603 = vtanh.f32 %v1175_v25 }
0x13c1   :  { %v1192_v14 = vor.u32 1.1754944e-38, %v1191_v37  ;;  %vm1190_vm14 = vcmp.eq.f32.partialorder %v1189_v33, 8.507059e+37 }
0x13c5   :  { %v1602_v30 = vpop.eup %1601 }
0x13c6   :  { %v1181_v31 = vmul.f32 %v1602_v30, %v1179_v28  ;;  %vm1186_vm11 = vweird.f32 %v1602_v30  ;;  %v1604_v29 = vpop.eup %1603 }
0x13c7   :  { %vm1187_vm13 = vmor %vm1185_vm12, %vm1186_vm11 }
0x13c8   :  { %v1182_v36 = vsub.f32 1.0, %v1181_v31 }
0x13ca   :  { %v1183_v39 = vmul.f32 %v1602_v30, %v1182_v36 }
0x13cc   :  { %v1184_v38 = vadd.f32 %v1602_v30, %v1183_v39 }
0x13ce   :  { %v1188_v5 = vsel %vm1187_vm13, %v1602_v30, %v1184_v38 }
0x13cf   :  { %v1193_v51 = vsel %vm1190_vm14, %v1192_v14, %v1188_v5 }
0x13d0   :  { %v1196_v35 = vsel %vm186_vm3, %v1193_v51, %v1604_v29 }
0x13d1   :  { %1199 = vrot.lane.b32.xlu0 %v1196_v35, %s1665_s27  ;;  %v1197_v12 = vmul.f32 %v1196_v35, %v1076_v59 }
0x1443   :  { %v1200_v40 = vpop.permute.xlu0 %1199 }
0x1444   :  { %v1202_v7 = vmul.f32 %v1200_v40, %v1196_v35 }
0x1446   :  { %1204 = vrot.lane.b32.xlu1 %v1202_v7, %s1665_s27 }
0x14b8   :  { %v1205_v42 = vpop.permute.xlu1 %1204 }
0x14b9   :  { %v1207_v13 = vadd.f32 %v1205_v42, %v1197_v12 }
0x14bb   :  { %1605 = vtanh.f32 %v1207_v13 }
0x14c1   :  { %v1606_v43 = vpop.eup %1605 }
0x14c2   :  { %1210 = vrot.lane.b32.xlu2 %v1606_v43, %s1665_s27 }
0x151c   :  { %v1211_v48 = vpop.permute.xlu2 %1210 }
0x151d   :  { %v1213_v49 = vmul.f32 %v1211_v48, %v1196_v35 }
0x151f   :  { %v1216_v50 = vpack.c.bf16 %v1213_v49, %v1213_v49 }
0x1521   :  { %1240 = vrot.lane.b32.xlu0 %v1216_v50, %s1662_s20 }
0x1593   :  { %v1241_v56 = vpop.permute.xlu0 %1240 }
0x1594   :  { %1435 = vmatmul.msk.bf16.vlgmr.msrb.gmra.mxu1 %vm141_vm6, %v1241_v56 }
0x1611   :  { %v1266_v60 = vpop.f32.mrf.mxu1 }
0x1612   :  { %v1267_v61 = vadd.f32 %v1266_v60, %v1235_v54 }
0x1614   :  { %v1271_v47 = vadd.f32 %v1476_v52, %v1267_v61 }
0x1616   :  { %v1272_v62 = vmax.f32 %v1271_v47, 0.0 }
0x1618   :  { %v1273_v63 = vpack.c.bf16 %v1272_v62, %v1272_v62 }
0x1619   :  { %v1268_v0 = vpop.f32.mrf.mxu1 }
0x161a   :  { %1444 = vmatmul.msk.bf16.vlgmr.msrb.gmra.mxu2 %vm141_vm6, %v1273_v63 }
0x169d   :  { %v1299_v3 = vpop.f32.mrf.mxu2 }
0x169e   :  { %v1300_v4 = vadd.f32 %v1477_v2, %v1299_v3 }
0x16a0   :  { %v1303_v10 = vmax.f32 %v1300_v4, 0.0 }
0x16a2   :  { %v1304_v11 = vpack.c.bf16 %v1303_v10, %v1303_v10 }
0x16a4   :  { %1453 = vmatmul.msk.bf16.vlgmr.msrb.gmra.mxu3 %vm141_vm6, %v1304_v11 }
0x16a5   :  { %v1301_v59 = vpop.f32.mrf.mxu2 }
0x1727   :  { %v1330_v8 = vpop.f32.mrf.mxu3 }
0x1728   :  { %v1331_v9 = vadd.f32 %v1478_v18, %v1330_v8 }
0x172a   :  { %1334 = vst [vmem:[#allocation5] sm:$0xff] %v1331_v9 }
0x172b   :  { %1345 = dma.vmem_to_hbm [thread:$0]  %s1341_s26, 128, %s1343_s29, [#allocation4]  }
0x172f   :  { %v1332_v19 = vpop.f32.mrf.mxu3 }
0x1730   :  { %1659 = dma.done.wait [#allocation4], 128  }
0x1731   :  { %1660 = vsyncadd [#allocation4], 4294967168 }
0x1732   :  { %1350 = vsyncpa [#allocation3], 1 }
0x1733   :  { %1351 = vsyncpa [#allocation4], 1 }

</bundles_post_ra>
